<compile_context>
chip_gen: v6e
topology: v6e:2x2x1
jax: 0.10.0
libtpu: 0.0.40
codegen_flags: <defaults>
</compile_context>

<pallas_src>
import math
import numpy as np
import jax
import jax.numpy as jnp
from jax import lax
from jax.experimental import pallas as pl
from jax.experimental.pallas import tpu as pltpu

HIGHEST = jax.lax.Precision.HIGHEST
TIME_CHUNK_MAX = 64   # max timesteps per grid step (multiple of 8)
INNER_UNROLL = 8      # bounded unroll of the in-chunk step loop


def _pick_time_chunk(T):
    """Multiple of 8, at most TIME_CHUNK_MAX, at least covering small T."""
    return int(min(TIME_CHUNK_MAX, ((T + 7) // 8) * 8))


def _device_vmem_cap_bytes():
    """Generation-aware VMEM cap (with headroom); safe fallback = 64 MiB."""
    cap = 64 * 1024 * 1024
    try:
        info = pltpu.get_tpu_info()
        phys = getattr(info, "vmem_capacity_bytes", None)
        if phys:
            cap = int(phys)
    except Exception:
        pass
    return int(cap * 0.85)   # leave headroom below physical / scoped limit


# ---------------------------------------------------------------------------
# Pallas kernel: one grid step = TC LSTM-cell steps.
# ---------------------------------------------------------------------------
def _lstm_chunk_kernel(gx_ref, wbd_ref, allh_ref, h_sc, c_sc):
    """gx_ref:   (TC, 4*BHP) f32  precomputed input proj + biases, gate-major.
       wbd_ref:  (BHP, 4*BHP) bf16 block-diagonal recurrent weight
                 (whole-array VMEM resident, single-buffered).
       allh_ref: (TC, BHP)   f32  hidden states for this chunk (lane-dense).
       h_sc/c_sc:(1, BHP)    f32  recurrent state, persists across grid steps."""
    bhp = h_sc.shape[1]
    tc = gx_ref.shape[0]

    @pl.when(pl.program_id(0) == 0)
    def _init():
        h_sc[...] = jnp.zeros_like(h_sc)
        c_sc[...] = jnp.zeros_like(c_sc)

    def step(s, carry):
        h, c = carry                                           # (1, BHP) each
        # Recurrence: ONE single-pass bf16 MXU matmul, f32 accumulation.
        # wbd_ref is read at the dot site (not hoisted) so Mosaic streams it
        # from VMEM instead of pinning 128x512 worth of vregs (review #6).
        gh = jnp.dot(h.astype(jnp.bfloat16), wbd_ref[...],
                     preferred_element_type=jnp.float32)
        gates = gx_ref[pl.ds(s, 1), :] + gh                    # (1, 4*BHP)
        # Gate slices are 128-lane aligned; the three sigmoid gates live on
        # the contiguous first 3*BHP lanes -> one EUP activation call.
        sig = jax.nn.sigmoid(gates[:, :3 * bhp])
        i_g = sig[:, 0 * bhp:1 * bhp]
        f_g = sig[:, 1 * bhp:2 * bhp]
        o_g = sig[:, 2 * bhp:3 * bhp]
        g_g = jnp.tanh(gates[:, 3 * bhp:4 * bhp])
        c_new = f_g * c + i_g * g_g
        # NOTE: the reference module uses relu(c), not tanh(c).
        h_new = o_g * jnp.maximum(c_new, 0.0)
        allh_ref[pl.ds(s, 1), :] = h_new
        return (h_new, c_new)

    h_fin, c_fin = lax.fori_loop(0, tc, step, (h_sc[...], c_sc[...]),
                                 unroll=INNER_UNROLL)
    h_sc[...] = h_fin
    c_sc[...] = c_fin


# ---------------------------------------------------------------------------
# Wrapper: mirrors LSTM.forward (num_layers=1).
# ---------------------------------------------------------------------------
def lstm_forward(tokens, params):
    """tokens: (T, B) int32.  Returns (softmax_out (B,2), all_hidden (B,T,H),
    all_outputs (B,T,2)) matching the PyTorch module's return convention."""
    emb = params['embedding']          # (V, I)
    wih = params['weight_ih']          # (B, 4H, I)
    whh = params['weight_hh']          # (B, 4H, H)
    bih = params['bias_ih']            # (B, 4H)
    bhh = params['bias_hh']            # (B, 4H)
    wlin = params['linear_w']          # (2, H)
    blin = params['linear_b']          # (1, 2)

    T, B = tokens.shape
    H = whh.shape[2]
    BH = B * H
    BHP = ((BH + 127) // 128) * 128            # lane-pad flattened batch*hidden
    TC = _pick_time_chunk(T)
    Tp = ((T + TC - 1) // TC) * TC             # time-pad to a whole chunk

    # --- glue: embedding lookup (gather) --------------------------------------
    x_emb = emb[tokens].astype(jnp.float32)    # (T, B, I)

    # --- precompute input projection + biases for ALL timesteps ---------------
    gx = jnp.einsum('tbi,bgi->tbg', x_emb, wih, precision=HIGHEST)   # (T, B, 4H)
    gx = gx + (bih + bhh)[None]                                      # fold biases
    gx = gx.reshape(T, B, 4, H).transpose(0, 2, 1, 3)                # (T,4,B,H)
    gx = gx.reshape(T, 4, BH)
    gx = jnp.pad(gx, ((0, Tp - T), (0, 0), (0, BHP - BH)))
    gx_flat = gx.reshape(Tp, 4 * BHP)          # column index = g*BHP + b*H + j

    # --- block-diagonal recurrent weight (built once, resident in the kernel) -
    # Avoids the dense (4,B,H,B,H) einsum-with-eye intermediate (review #4).
    whh_g = whh.reshape(B, 4, H, H)                       # [b, g, j(out), k(in)]
    blocks = jnp.transpose(whh_g, (1, 0, 3, 2))           # [g, b, k(in), j(out)]
    w_bd = jnp.zeros((4, BH, BH), jnp.float32)
    for b in range(B):                                    # B is static & small
        w_bd = w_bd.at[:, b * H:(b + 1) * H, b * H:(b + 1) * H].set(blocks[:, b])
    w_bd = jnp.pad(w_bd, ((0, 0), (0, BHP - BH), (0, BHP - BH)))
    w_full = jnp.transpose(w_bd, (1, 0, 2)).reshape(BHP, 4 * BHP)
    w_full = w_full.astype(jnp.bfloat16)       # single-pass MXU path (review #1)

    # --- VMEM budget: exact estimate, generation-aware cap (review #8) --------
    bytes_gx = 2 * TC * 4 * BHP * 4            # gx time chunk, double-buffered
    bytes_w = BHP * 4 * BHP * 2                # bf16 weight, single-buffered
    bytes_out = 2 * TC * BHP * 4               # hidden slab, double-buffered
    bytes_scr = 2 * BHP * 4                    # h/c scratch
    need = bytes_gx + bytes_w + bytes_out + bytes_scr
    vmem_limit = int(min(_device_vmem_cap_bytes(),
                         max(16 * 1024 * 1024, int(need * 1.5))))

    grid_spec = pltpu.PrefetchScalarGridSpec(
        num_scalar_prefetch=0,
        grid=(Tp // TC,),
        in_specs=[
            pl.BlockSpec((TC, 4 * BHP), lambda t: (t, 0)),        # gx time chunk
            # Constant recurrent weight: whole-array, single-buffered in VMEM.
            pl.BlockSpec(memory_space=pltpu.MemorySpace.VMEM),
        ],
        out_specs=pl.BlockSpec((TC, BHP), lambda t: (t, 0)),      # hidden slab
        scratch_shapes=[
            pltpu.VMEM((1, BHP), jnp.float32),   # h state
            pltpu.VMEM((1, BHP), jnp.float32),   # c state
        ],
    )

    all_h_flat = pl.pallas_call(
        _lstm_chunk_kernel,
        out_shape=jax.ShapeDtypeStruct((Tp, BHP), jnp.float32),
        grid_spec=grid_spec,
        compiler_params=pltpu.CompilerParams(
            dimension_semantics=("arbitrary",),   # time recurrence carries state
            vmem_limit_bytes=vmem_limit),
    )(gx_flat, w_full)

    # --- unpad, and apply the 2-wide linear head OUTSIDE the kernel -----------
    all_h = all_h_flat[:T, :BH].reshape(T, B, H)
    all_out_t = jnp.einsum('tbh,oh->tbo', all_h, wlin,
                           precision=HIGHEST) + blin[0]        # (T, B, 2)
    softmax_out = all_out_t[T - 1]                             # linear(h_last)
    all_hidden = jnp.transpose(all_h, (1, 0, 2))               # (B, T, H)
    all_outputs = jnp.transpose(all_out_t, (1, 0, 2))          # (B, T, 2)
    return softmax_out, all_hidden, all_outputs


# ---------------------------------------------------------------------------
# Pure-JAX f32 reference (same math as the PyTorch module) for correctness.
# ---------------------------------------------------------------------------
def lstm_reference(tokens, params):
    emb = params['embedding']
    wih, whh = params['weight_ih'], params['weight_hh']
    bih, bhh = params['bias_ih'], params['bias_hh']
    wlin, blin = params['linear_w'], params['linear_b']
    T, B = tokens.shape
    H = whh.shape[2]
    x_emb = emb[tokens].astype(jnp.float32)
    h = jnp.zeros((B, H), jnp.float32)
    c = jnp.zeros((B, H), jnp.float32)
    hs, outs = [], []
    for t in range(T):
        gates = (jnp.einsum('bgi,bi->bg', wih, x_emb[t], precision=HIGHEST)
                 + jnp.einsum('bgh,bh->bg', whh, h, precision=HIGHEST)
                 + bih + bhh)
        i_g = jax.nn.sigmoid(gates[:, :H])
        f_g = jax.nn.sigmoid(gates[:, H:2 * H])
        o_g = jax.nn.sigmoid(gates[:, 2 * H:3 * H])
        g_g = jnp.tanh(gates[:, 3 * H:])
        c = f_g * c + i_g * g_g
        h = o_g * jnp.maximum(c, 0.0)
        hs.append(h)
        outs.append(jnp.dot(h, wlin.T, precision=HIGHEST) + blin[0])
    all_h = jnp.stack(hs)      # (T, B, H)
    all_o = jnp.stack(outs)    # (T, B, 2)
    return (all_o[-1], jnp.transpose(all_h, (1, 0, 2)),
            jnp.transpose(all_o, (1, 0, 2)))


if __name__ == "__main__":
    # Small shapes consistent with the module.
    T, B = 8, 2            # sequence length, batch_size
    V = 20                 # vocab_size
    I = 16                 # input_units (embedding dim of nn.Embedding(vocab, input_units))
    H = 32                 # hidden_units
    NUM_CHUNKS = 4

    key = jax.random.PRNGKey(0)
    ks = jax.random.split(key, 8)
    stdv = 1.0 / math.sqrt(H)

    params = {
        'embedding': jax.random.normal(ks[0], (V, I), jnp.float32),
        'weight_ih': jax.random.uniform(ks[1], (B, NUM_CHUNKS * H, I),
                                        jnp.float32, -stdv, stdv),
        'weight_hh': jax.random.uniform(ks[2], (B, NUM_CHUNKS * H, H),
                                        jnp.float32, -stdv, stdv),
        'bias_ih': jax.random.uniform(ks[3], (B, NUM_CHUNKS * H),
                                      jnp.float32, -stdv, stdv),
        'bias_hh': jax.random.uniform(ks[4], (B, NUM_CHUNKS * H),
                                      jnp.float32, -stdv, stdv),
        'linear_w': jax.random.uniform(ks[5], (2, H), jnp.float32,
                                       -stdv, stdv),
        'linear_b': jax.random.uniform(ks[6], (1, 2), jnp.float32,
                                       -stdv, stdv),
    }

    tokens = jax.random.randint(ks[7], (T, B), 0, V, dtype=jnp.int32)

    fwd = jax.jit(lstm_forward)
    softmax_out, all_hidden, all_outputs = fwd(tokens, params)
    jax.block_until_ready((softmax_out, all_hidden, all_outputs))

    ref_sm, ref_h, ref_o = lstm_reference(tokens, params)
    # The in-kernel recurrence now runs single-pass bf16 on the MXU (perf
    # review #1); error compounds over T vs. the f32/HIGHEST reference, so the
    # tolerance is relaxed (observed error ~1e-3; structural bugs are >>3e-2).
    np.testing.assert_allclose(np.asarray(softmax_out), np.asarray(ref_sm),
                               rtol=3e-2, atol=3e-2)
    np.testing.assert_allclose(np.asarray(all_hidden), np.asarray(ref_h),
                               rtol=3e-2, atol=3e-2)
    np.testing.assert_allclose(np.asarray(all_outputs), np.asarray(ref_o),
                               rtol=3e-2, atol=3e-2)

    print("KERNEL_OK")
</pallas_src>

<mosaic_0001>
module attributes {stable_mosaic.version = 11 : i64} {
  func.func @_lstm_chunk_kernel(%arg0: i32, %arg1: memref<8x512xf32, #tpu.memory_space<vmem>>, %arg2: memref<128x512xbf16, #tpu.memory_space<vmem>>, %arg3: memref<8x128xf32, #tpu.memory_space<vmem>>, %arg4: memref<1x128xf32, #tpu.memory_space<vmem>>, %arg5: memref<1x128xf32, #tpu.memory_space<vmem>>) attributes {dimension_semantics = [#tpu.dimension_semantics<arbitrary>], iteration_bounds = array<i64: 1>, scalar_prefetch = 0 : i64, scratch_operands = 2 : i64, tpu.core_type = #tpu.core_type<tc>, window_params = [{transform_indices = @transform_0, window_bounds = array<i64: 8, 512>}, {pipeline_mode = #tpu.pipeline_mode<synchronous>, transform_indices = @transform_1, window_bounds = array<i64: 128, 512>}, {transform_indices = @transform_2, window_bounds = array<i64: 8, 128>}]} {
    %c0_i32 = arith.constant 0 : i32
    %0 = arith.cmpi eq, %arg0, %c0_i32 : i32
    %1 = arith.extui %0 : i1 to i32
    %c0_i32_0 = arith.constant 0 : i32
    %2 = arith.cmpi ne, %1, %c0_i32_0 : i32
    scf.if %2 {
      %cst_64 = arith.constant 0.000000e+00 : f32
      %207 = vector.broadcast %cst_64 : f32 to vector<1x128xf32>
      %c0_65 = arith.constant 0 : index
      %c0_66 = arith.constant 0 : index
      %208 = vector.load %arg4[%c0_65, %c0_66] : memref<1x128xf32, #tpu.memory_space<vmem>>, vector<1x128xf32>
      tpu.vector_store %arg4[%c0_65, %c0_66], %207 {strides = array<i32>} : memref<1x128xf32, #tpu.memory_space<vmem>>, vector<1x128xf32>,
      %cst_67 = arith.constant 0.000000e+00 : f32
      %209 = vector.broadcast %cst_67 : f32 to vector<1x128xf32>
      %c0_68 = arith.constant 0 : index
      %c0_69 = arith.constant 0 : index
      %210 = vector.load %arg5[%c0_68, %c0_69] : memref<1x128xf32, #tpu.memory_space<vmem>>, vector<1x128xf32>
      tpu.vector_store %arg5[%c0_68, %c0_69], %209 {strides = array<i32>} : memref<1x128xf32, #tpu.memory_space<vmem>>, vector<1x128xf32>,
    } else {
    }
    %c0 = arith.constant 0 : index
    %c0_1 = arith.constant 0 : index
    %3 = vector.load %arg4[%c0, %c0_1] : memref<1x128xf32, #tpu.memory_space<vmem>>, vector<1x128xf32>
    %c0_2 = arith.constant 0 : index
    %c0_3 = arith.constant 0 : index
    %4 = vector.load %arg5[%c0_2, %c0_3] : memref<1x128xf32, #tpu.memory_space<vmem>>, vector<1x128xf32>
    %c0_i32_4 = arith.constant 0 : i32
    %5 = arith.truncf %3 : vector<1x128xf32> to vector<1x128xbf16>
    %c0_5 = arith.constant 0 : index
    %c0_6 = arith.constant 0 : index
    %6 = vector.load %arg2[%c0_5, %c0_6] : memref<128x512xbf16, #tpu.memory_space<vmem>>, vector<128x512xbf16>
    %cst = arith.constant dense<0.000000e+00> : vector<1x512xf32>
    %7 = tpu.matmul %5, %6, %cst {dimension_numbers = #tpu.dot_dimension_numbers<[1], [0], [0], [1], [0, 0, 1, 1], [], []>} : vector<1x128xbf16>, vector<128x512xbf16>, vector<1x512xf32> -> vector<1x512xf32>
    %8 = arith.index_cast %c0_i32_4 : i32 to index
    %c0_7 = arith.constant 0 : index
    %9 = vector.load %arg1[%8, %c0_7] : memref<8x512xf32, #tpu.memory_space<vmem>>, vector<1x512xf32>
    %10 = arith.addf %9, %7 : vector<1x512xf32>
    %11 = vector.extract_strided_slice %10 {offsets = [0, 0], sizes = [1, 384], strides = [1, 1]} : vector<1x512xf32> to vector<1x384xf32>
    %12 = arith.negf %11 : vector<1x384xf32>
    %13 = math.exp %12 : vector<1x384xf32>
    %cst_8 = arith.constant 1.000000e+00 : f32
    %14 = vector.broadcast %cst_8 : f32 to vector<1x384xf32>
    %15 = arith.addf %14, %13 : vector<1x384xf32>
    %16 = arith.divf %14, %15 : vector<1x384xf32>
    %17 = vector.extract_strided_slice %16 {offsets = [0, 0], sizes = [1, 128], strides = [1, 1]} : vector<1x384xf32> to vector<1x128xf32>
    %18 = vector.extract_strided_slice %16 {offsets = [0, 128], sizes = [1, 128], strides = [1, 1]} : vector<1x384xf32> to vector<1x128xf32>
    %19 = vector.extract_strided_slice %16 {offsets = [0, 256], sizes = [1, 128], strides = [1, 1]} : vector<1x384xf32> to vector<1x128xf32>
    %20 = vector.extract_strided_slice %10 {offsets = [0, 384], sizes = [1, 128], strides = [1, 1]} : vector<1x512xf32> to vector<1x128xf32>
    %21 = math.tanh %20 : vector<1x128xf32>
    %22 = arith.mulf %18, %4 : vector<1x128xf32>
    %23 = arith.mulf %17, %21 : vector<1x128xf32>
    %24 = arith.addf %22, %23 : vector<1x128xf32>
    %cst_9 = arith.constant 0.000000e+00 : f32
    %25 = vector.broadcast %cst_9 : f32 to vector<1x128xf32>
    %26 = arith.maximumf %24, %25 : vector<1x128xf32>
    %27 = arith.mulf %19, %26 : vector<1x128xf32>
    %28 = arith.index_cast %c0_i32_4 : i32 to index
    %c0_10 = arith.constant 0 : index
    %29 = vector.load %arg3[%28, %c0_10] : memref<8x128xf32, #tpu.memory_space<vmem>>, vector<1x128xf32>
    tpu.vector_store %arg3[%28, %c0_10], %27 {strides = array<i32>} : memref<8x128xf32, #tpu.memory_space<vmem>>, vector<1x128xf32>,
    %c1_i32 = arith.constant 1 : i32
    %30 = arith.truncf %27 : vector<1x128xf32> to vector<1x128xbf16>
    %c0_11 = arith.constant 0 : index
    %c0_12 = arith.constant 0 : index
    %31 = vector.load %arg2[%c0_11, %c0_12] : memref<128x512xbf16, #tpu.memory_space<vmem>>, vector<128x512xbf16>
    %cst_13 = arith.constant dense<0.000000e+00> : vector<1x512xf32>
    %32 = tpu.matmul %30, %31, %cst_13 {dimension_numbers = #tpu.dot_dimension_numbers<[1], [0], [0], [1], [0, 0, 1, 1], [], []>} : vector<1x128xbf16>, vector<128x512xbf16>, vector<1x512xf32> -> vector<1x512xf32>
    %33 = arith.index_cast %c1_i32 : i32 to index
    %c0_14 = arith.constant 0 : index
    %34 = vector.load %arg1[%33, %c0_14] : memref<8x512xf32, #tpu.memory_space<vmem>>, vector<1x512xf32>
    %35 = arith.addf %34, %32 : vector<1x512xf32>
    %36 = vector.extract_strided_slice %35 {offsets = [0, 0], sizes = [1, 384], strides = [1, 1]} : vector<1x512xf32> to vector<1x384xf32>
    %37 = arith.negf %36 : vector<1x384xf32>
    %38 = math.exp %37 : vector<1x384xf32>
    %cst_15 = arith.constant 1.000000e+00 : f32
    %39 = vector.broadcast %cst_15 : f32 to vector<1x384xf32>
    %40 = arith.addf %39, %38 : vector<1x384xf32>
    %41 = arith.divf %39, %40 : vector<1x384xf32>
    %42 = vector.extract_strided_slice %41 {offsets = [0, 0], sizes = [1, 128], strides = [1, 1]} : vector<1x384xf32> to vector<1x128xf32>
    %43 = vector.extract_strided_slice %41 {offsets = [0, 128], sizes = [1, 128], strides = [1, 1]} : vector<1x384xf32> to vector<1x128xf32>
    %44 = vector.extract_strided_slice %41 {offsets = [0, 256], sizes = [1, 128], strides = [1, 1]} : vector<1x384xf32> to vector<1x128xf32>
    %45 = vector.extract_strided_slice %35 {offsets = [0, 384], sizes = [1, 128], strides = [1, 1]} : vector<1x512xf32> to vector<1x128xf32>
    %46 = math.tanh %45 : vector<1x128xf32>
    %47 = arith.mulf %43, %24 : vector<1x128xf32>
    %48 = arith.mulf %42, %46 : vector<1x128xf32>
    %49 = arith.addf %47, %48 : vector<1x128xf32>
    %cst_16 = arith.constant 0.000000e+00 : f32
    %50 = vector.broadcast %cst_16 : f32 to vector<1x128xf32>
    %51 = arith.maximumf %49, %50 : vector<1x128xf32>
    %52 = arith.mulf %44, %51 : vector<1x128xf32>
    %53 = arith.index_cast %c1_i32 : i32 to index
    %c0_17 = arith.constant 0 : index
    %54 = vector.load %arg3[%53, %c0_17] : memref<8x128xf32, #tpu.memory_space<vmem>>, vector<1x128xf32>
    tpu.vector_store %arg3[%53, %c0_17], %52 {strides = array<i32>} : memref<8x128xf32, #tpu.memory_space<vmem>>, vector<1x128xf32>,
    %c2_i32 = arith.constant 2 : i32
    %55 = arith.truncf %52 : vector<1x128xf32> to vector<1x128xbf16>
    %c0_18 = arith.constant 0 : index
    %c0_19 = arith.constant 0 : index
    %56 = vector.load %arg2[%c0_18, %c0_19] : memref<128x512xbf16, #tpu.memory_space<vmem>>, vector<128x512xbf16>
    %cst_20 = arith.constant dense<0.000000e+00> : vector<1x512xf32>
    %57 = tpu.matmul %55, %56, %cst_20 {dimension_numbers = #tpu.dot_dimension_numbers<[1], [0], [0], [1], [0, 0, 1, 1], [], []>} : vector<1x128xbf16>, vector<128x512xbf16>, vector<1x512xf32> -> vector<1x512xf32>
    %58 = arith.index_cast %c2_i32 : i32 to index
    %c0_21 = arith.constant 0 : index
    %59 = vector.load %arg1[%58, %c0_21] : memref<8x512xf32, #tpu.memory_space<vmem>>, vector<1x512xf32>
    %60 = arith.addf %59, %57 : vector<1x512xf32>
    %61 = vector.extract_strided_slice %60 {offsets = [0, 0], sizes = [1, 384], strides = [1, 1]} : vector<1x512xf32> to vector<1x384xf32>
    %62 = arith.negf %61 : vector<1x384xf32>
    %63 = math.exp %62 : vector<1x384xf32>
    %cst_22 = arith.constant 1.000000e+00 : f32
    %64 = vector.broadcast %cst_22 : f32 to vector<1x384xf32>
    %65 = arith.addf %64, %63 : vector<1x384xf32>
    %66 = arith.divf %64, %65 : vector<1x384xf32>
    %67 = vector.extract_strided_slice %66 {offsets = [0, 0], sizes = [1, 128], strides = [1, 1]} : vector<1x384xf32> to vector<1x128xf32>
    %68 = vector.extract_strided_slice %66 {offsets = [0, 128], sizes = [1, 128], strides = [1, 1]} : vector<1x384xf32> to vector<1x128xf32>
    %69 = vector.extract_strided_slice %66 {offsets = [0, 256], sizes = [1, 128], strides = [1, 1]} : vector<1x384xf32> to vector<1x128xf32>
    %70 = vector.extract_strided_slice %60 {offsets = [0, 384], sizes = [1, 128], strides = [1, 1]} : vector<1x512xf32> to vector<1x128xf32>
    %71 = math.tanh %70 : vector<1x128xf32>
    %72 = arith.mulf %68, %49 : vector<1x128xf32>
    %73 = arith.mulf %67, %71 : vector<1x128xf32>
    %74 = arith.addf %72, %73 : vector<1x128xf32>
    %cst_23 = arith.constant 0.000000e+00 : f32
    %75 = vector.broadcast %cst_23 : f32 to vector<1x128xf32>
    %76 = arith.maximumf %74, %75 : vector<1x128xf32>
    %77 = arith.mulf %69, %76 : vector<1x128xf32>
    %78 = arith.index_cast %c2_i32 : i32 to index
    %c0_24 = arith.constant 0 : index
    %79 = vector.load %arg3[%78, %c0_24] : memref<8x128xf32, #tpu.memory_space<vmem>>, vector<1x128xf32>
    tpu.vector_store %arg3[%78, %c0_24], %77 {strides = array<i32>} : memref<8x128xf32, #tpu.memory_space<vmem>>, vector<1x128xf32>,
    %c3_i32 = arith.constant 3 : i32
    %80 = arith.truncf %77 : vector<1x128xf32> to vector<1x128xbf16>
    %c0_25 = arith.constant 0 : index
    %c0_26 = arith.constant 0 : index
    %81 = vector.load %arg2[%c0_25, %c0_26] : memref<128x512xbf16, #tpu.memory_space<vmem>>, vector<128x512xbf16>
    %cst_27 = arith.constant dense<0.000000e+00> : vector<1x512xf32>
    %82 = tpu.matmul %80, %81, %cst_27 {dimension_numbers = #tpu.dot_dimension_numbers<[1], [0], [0], [1], [0, 0, 1, 1], [], []>} : vector<1x128xbf16>, vector<128x512xbf16>, vector<1x512xf32> -> vector<1x512xf32>
    %83 = arith.index_cast %c3_i32 : i32 to index
    %c0_28 = arith.constant 0 : index
    %84 = vector.load %arg1[%83, %c0_28] : memref<8x512xf32, #tpu.memory_space<vmem>>, vector<1x512xf32>
    %85 = arith.addf %84, %82 : vector<1x512xf32>
    %86 = vector.extract_strided_slice %85 {offsets = [0, 0], sizes = [1, 384], strides = [1, 1]} : vector<1x512xf32> to vector<1x384xf32>
    %87 = arith.negf %86 : vector<1x384xf32>
    %88 = math.exp %87 : vector<1x384xf32>
    %cst_29 = arith.constant 1.000000e+00 : f32
    %89 = vector.broadcast %cst_29 : f32 to vector<1x384xf32>
    %90 = arith.addf %89, %88 : vector<1x384xf32>
    %91 = arith.divf %89, %90 : vector<1x384xf32>
    %92 = vector.extract_strided_slice %91 {offsets = [0, 0], sizes = [1, 128], strides = [1, 1]} : vector<1x384xf32> to vector<1x128xf32>
    %93 = vector.extract_strided_slice %91 {offsets = [0, 128], sizes = [1, 128], strides = [1, 1]} : vector<1x384xf32> to vector<1x128xf32>
    %94 = vector.extract_strided_slice %91 {offsets = [0, 256], sizes = [1, 128], strides = [1, 1]} : vector<1x384xf32> to vector<1x128xf32>
    %95 = vector.extract_strided_slice %85 {offsets = [0, 384], sizes = [1, 128], strides = [1, 1]} : vector<1x512xf32> to vector<1x128xf32>
    %96 = math.tanh %95 : vector<1x128xf32>
    %97 = arith.mulf %93, %74 : vector<1x128xf32>
    %98 = arith.mulf %92, %96 : vector<1x128xf32>
    %99 = arith.addf %97, %98 : vector<1x128xf32>
    %cst_30 = arith.constant 0.000000e+00 : f32
    %100 = vector.broadcast %cst_30 : f32 to vector<1x128xf32>
    %101 = arith.maximumf %99, %100 : vector<1x128xf32>
    %102 = arith.mulf %94, %101 : vector<1x128xf32>
    %103 = arith.index_cast %c3_i32 : i32 to index
    %c0_31 = arith.constant 0 : index
    %104 = vector.load %arg3[%103, %c0_31] : memref<8x128xf32, #tpu.memory_space<vmem>>, vector<1x128xf32>
    tpu.vector_store %arg3[%103, %c0_31], %102 {strides = array<i32>} : memref<8x128xf32, #tpu.memory_space<vmem>>, vector<1x128xf32>,
    %c4_i32 = arith.constant 4 : i32
    %105 = arith.truncf %102 : vector<1x128xf32> to vector<1x128xbf16>
    %c0_32 = arith.constant 0 : index
    %c0_33 = arith.constant 0 : index
    %106 = vector.load %arg2[%c0_32, %c0_33] : memref<128x512xbf16, #tpu.memory_space<vmem>>, vector<128x512xbf16>
    %cst_34 = arith.constant dense<0.000000e+00> : vector<1x512xf32>
    %107 = tpu.matmul %105, %106, %cst_34 {dimension_numbers = #tpu.dot_dimension_numbers<[1], [0], [0], [1], [0, 0, 1, 1], [], []>} : vector<1x128xbf16>, vector<128x512xbf16>, vector<1x512xf32> -> vector<1x512xf32>
    %108 = arith.index_cast %c4_i32 : i32 to index
    %c0_35 = arith.constant 0 : index
    %109 = vector.load %arg1[%108, %c0_35] : memref<8x512xf32, #tpu.memory_space<vmem>>, vector<1x512xf32>
    %110 = arith.addf %109, %107 : vector<1x512xf32>
    %111 = vector.extract_strided_slice %110 {offsets = [0, 0], sizes = [1, 384], strides = [1, 1]} : vector<1x512xf32> to vector<1x384xf32>
    %112 = arith.negf %111 : vector<1x384xf32>
    %113 = math.exp %112 : vector<1x384xf32>
    %cst_36 = arith.constant 1.000000e+00 : f32
    %114 = vector.broadcast %cst_36 : f32 to vector<1x384xf32>
    %115 = arith.addf %114, %113 : vector<1x384xf32>
    %116 = arith.divf %114, %115 : vector<1x384xf32>
    %117 = vector.extract_strided_slice %116 {offsets = [0, 0], sizes = [1, 128], strides = [1, 1]} : vector<1x384xf32> to vector<1x128xf32>
    %118 = vector.extract_strided_slice %116 {offsets = [0, 128], sizes = [1, 128], strides = [1, 1]} : vector<1x384xf32> to vector<1x128xf32>
    %119 = vector.extract_strided_slice %116 {offsets = [0, 256], sizes = [1, 128], strides = [1, 1]} : vector<1x384xf32> to vector<1x128xf32>
    %120 = vector.extract_strided_slice %110 {offsets = [0, 384], sizes = [1, 128], strides = [1, 1]} : vector<1x512xf32> to vector<1x128xf32>
    %121 = math.tanh %120 : vector<1x128xf32>
    %122 = arith.mulf %118, %99 : vector<1x128xf32>
    %123 = arith.mulf %117, %121 : vector<1x128xf32>
    %124 = arith.addf %122, %123 : vector<1x128xf32>
    %cst_37 = arith.constant 0.000000e+00 : f32
    %125 = vector.broadcast %cst_37 : f32 to vector<1x128xf32>
    %126 = arith.maximumf %124, %125 : vector<1x128xf32>
    %127 = arith.mulf %119, %126 : vector<1x128xf32>
    %128 = arith.index_cast %c4_i32 : i32 to index
    %c0_38 = arith.constant 0 : index
    %129 = vector.load %arg3[%128, %c0_38] : memref<8x128xf32, #tpu.memory_space<vmem>>, vector<1x128xf32>
    tpu.vector_store %arg3[%128, %c0_38], %127 {strides = array<i32>} : memref<8x128xf32, #tpu.memory_space<vmem>>, vector<1x128xf32>,
    %c5_i32 = arith.constant 5 : i32
    %130 = arith.truncf %127 : vector<1x128xf32> to vector<1x128xbf16>
    %c0_39 = arith.constant 0 : index
    %c0_40 = arith.constant 0 : index
    %131 = vector.load %arg2[%c0_39, %c0_40] : memref<128x512xbf16, #tpu.memory_space<vmem>>, vector<128x512xbf16>
    %cst_41 = arith.constant dense<0.000000e+00> : vector<1x512xf32>
    %132 = tpu.matmul %130, %131, %cst_41 {dimension_numbers = #tpu.dot_dimension_numbers<[1], [0], [0], [1], [0, 0, 1, 1], [], []>} : vector<1x128xbf16>, vector<128x512xbf16>, vector<1x512xf32> -> vector<1x512xf32>
    %133 = arith.index_cast %c5_i32 : i32 to index
    %c0_42 = arith.constant 0 : index
    %134 = vector.load %arg1[%133, %c0_42] : memref<8x512xf32, #tpu.memory_space<vmem>>, vector<1x512xf32>
    %135 = arith.addf %134, %132 : vector<1x512xf32>
    %136 = vector.extract_strided_slice %135 {offsets = [0, 0], sizes = [1, 384], strides = [1, 1]} : vector<1x512xf32> to vector<1x384xf32>
    %137 = arith.negf %136 : vector<1x384xf32>
    %138 = math.exp %137 : vector<1x384xf32>
    %cst_43 = arith.constant 1.000000e+00 : f32
    %139 = vector.broadcast %cst_43 : f32 to vector<1x384xf32>
    %140 = arith.addf %139, %138 : vector<1x384xf32>
    %141 = arith.divf %139, %140 : vector<1x384xf32>
    %142 = vector.extract_strided_slice %141 {offsets = [0, 0], sizes = [1, 128], strides = [1, 1]} : vector<1x384xf32> to vector<1x128xf32>
    %143 = vector.extract_strided_slice %141 {offsets = [0, 128], sizes = [1, 128], strides = [1, 1]} : vector<1x384xf32> to vector<1x128xf32>
    %144 = vector.extract_strided_slice %141 {offsets = [0, 256], sizes = [1, 128], strides = [1, 1]} : vector<1x384xf32> to vector<1x128xf32>
    %145 = vector.extract_strided_slice %135 {offsets = [0, 384], sizes = [1, 128], strides = [1, 1]} : vector<1x512xf32> to vector<1x128xf32>
    %146 = math.tanh %145 : vector<1x128xf32>
    %147 = arith.mulf %143, %124 : vector<1x128xf32>
    %148 = arith.mulf %142, %146 : vector<1x128xf32>
    %149 = arith.addf %147, %148 : vector<1x128xf32>
    %cst_44 = arith.constant 0.000000e+00 : f32
    %150 = vector.broadcast %cst_44 : f32 to vector<1x128xf32>
    %151 = arith.maximumf %149, %150 : vector<1x128xf32>
    %152 = arith.mulf %144, %151 : vector<1x128xf32>
    %153 = arith.index_cast %c5_i32 : i32 to index
    %c0_45 = arith.constant 0 : index
    %154 = vector.load %arg3[%153, %c0_45] : memref<8x128xf32, #tpu.memory_space<vmem>>, vector<1x128xf32>
    tpu.vector_store %arg3[%153, %c0_45], %152 {strides = array<i32>} : memref<8x128xf32, #tpu.memory_space<vmem>>, vector<1x128xf32>,
    %c6_i32 = arith.constant 6 : i32
    %155 = arith.truncf %152 : vector<1x128xf32> to vector<1x128xbf16>
    %c0_46 = arith.constant 0 : index
    %c0_47 = arith.constant 0 : index
    %156 = vector.load %arg2[%c0_46, %c0_47] : memref<128x512xbf16, #tpu.memory_space<vmem>>, vector<128x512xbf16>
    %cst_48 = arith.constant dense<0.000000e+00> : vector<1x512xf32>
    %157 = tpu.matmul %155, %156, %cst_48 {dimension_numbers = #tpu.dot_dimension_numbers<[1], [0], [0], [1], [0, 0, 1, 1], [], []>} : vector<1x128xbf16>, vector<128x512xbf16>, vector<1x512xf32> -> vector<1x512xf32>
    %158 = arith.index_cast %c6_i32 : i32 to index
    %c0_49 = arith.constant 0 : index
    %159 = vector.load %arg1[%158, %c0_49] : memref<8x512xf32, #tpu.memory_space<vmem>>, vector<1x512xf32>
    %160 = arith.addf %159, %157 : vector<1x512xf32>
    %161 = vector.extract_strided_slice %160 {offsets = [0, 0], sizes = [1, 384], strides = [1, 1]} : vector<1x512xf32> to vector<1x384xf32>
    %162 = arith.negf %161 : vector<1x384xf32>
    %163 = math.exp %162 : vector<1x384xf32>
    %cst_50 = arith.constant 1.000000e+00 : f32
    %164 = vector.broadcast %cst_50 : f32 to vector<1x384xf32>
    %165 = arith.addf %164, %163 : vector<1x384xf32>
    %166 = arith.divf %164, %165 : vector<1x384xf32>
    %167 = vector.extract_strided_slice %166 {offsets = [0, 0], sizes = [1, 128], strides = [1, 1]} : vector<1x384xf32> to vector<1x128xf32>
    %168 = vector.extract_strided_slice %166 {offsets = [0, 128], sizes = [1, 128], strides = [1, 1]} : vector<1x384xf32> to vector<1x128xf32>
    %169 = vector.extract_strided_slice %166 {offsets = [0, 256], sizes = [1, 128], strides = [1, 1]} : vector<1x384xf32> to vector<1x128xf32>
    %170 = vector.extract_strided_slice %160 {offsets = [0, 384], sizes = [1, 128], strides = [1, 1]} : vector<1x512xf32> to vector<1x128xf32>
    %171 = math.tanh %170 : vector<1x128xf32>
    %172 = arith.mulf %168, %149 : vector<1x128xf32>
    %173 = arith.mulf %167, %171 : vector<1x128xf32>
    %174 = arith.addf %172, %173 : vector<1x128xf32>
    %cst_51 = arith.constant 0.000000e+00 : f32
    %175 = vector.broadcast %cst_51 : f32 to vector<1x128xf32>
    %176 = arith.maximumf %174, %175 : vector<1x128xf32>
    %177 = arith.mulf %169, %176 : vector<1x128xf32>
    %178 = arith.index_cast %c6_i32 : i32 to index
    %c0_52 = arith.constant 0 : index
    %179 = vector.load %arg3[%178, %c0_52] : memref<8x128xf32, #tpu.memory_space<vmem>>, vector<1x128xf32>
    tpu.vector_store %arg3[%178, %c0_52], %177 {strides = array<i32>} : memref<8x128xf32, #tpu.memory_space<vmem>>, vector<1x128xf32>,
    %c7_i32 = arith.constant 7 : i32
    %180 = arith.truncf %177 : vector<1x128xf32> to vector<1x128xbf16>
    %c0_53 = arith.constant 0 : index
    %c0_54 = arith.constant 0 : index
    %181 = vector.load %arg2[%c0_53, %c0_54] : memref<128x512xbf16, #tpu.memory_space<vmem>>, vector<128x512xbf16>
    %cst_55 = arith.constant dense<0.000000e+00> : vector<1x512xf32>
    %182 = tpu.matmul %180, %181, %cst_55 {dimension_numbers = #tpu.dot_dimension_numbers<[1], [0], [0], [1], [0, 0, 1, 1], [], []>} : vector<1x128xbf16>, vector<128x512xbf16>, vector<1x512xf32> -> vector<1x512xf32>
    %183 = arith.index_cast %c7_i32 : i32 to index
    %c0_56 = arith.constant 0 : index
    %184 = vector.load %arg1[%183, %c0_56] : memref<8x512xf32, #tpu.memory_space<vmem>>, vector<1x512xf32>
    %185 = arith.addf %184, %182 : vector<1x512xf32>
    %186 = vector.extract_strided_slice %185 {offsets = [0, 0], sizes = [1, 384], strides = [1, 1]} : vector<1x512xf32> to vector<1x384xf32>
    %187 = arith.negf %186 : vector<1x384xf32>
    %188 = math.exp %187 : vector<1x384xf32>
    %cst_57 = arith.constant 1.000000e+00 : f32
    %189 = vector.broadcast %cst_57 : f32 to vector<1x384xf32>
    %190 = arith.addf %189, %188 : vector<1x384xf32>
    %191 = arith.divf %189, %190 : vector<1x384xf32>
    %192 = vector.extract_strided_slice %191 {offsets = [0, 0], sizes = [1, 128], strides = [1, 1]} : vector<1x384xf32> to vector<1x128xf32>
    %193 = vector.extract_strided_slice %191 {offsets = [0, 128], sizes = [1, 128], strides = [1, 1]} : vector<1x384xf32> to vector<1x128xf32>
    %194 = vector.extract_strided_slice %191 {offsets = [0, 256], sizes = [1, 128], strides = [1, 1]} : vector<1x384xf32> to vector<1x128xf32>
    %195 = vector.extract_strided_slice %185 {offsets = [0, 384], sizes = [1, 128], strides = [1, 1]} : vector<1x512xf32> to vector<1x128xf32>
    %196 = math.tanh %195 : vector<1x128xf32>
    %197 = arith.mulf %193, %174 : vector<1x128xf32>
    %198 = arith.mulf %192, %196 : vector<1x128xf32>
    %199 = arith.addf %197, %198 : vector<1x128xf32>
    %cst_58 = arith.constant 0.000000e+00 : f32
    %200 = vector.broadcast %cst_58 : f32 to vector<1x128xf32>
    %201 = arith.maximumf %199, %200 : vector<1x128xf32>
    %202 = arith.mulf %194, %201 : vector<1x128xf32>
    %203 = arith.index_cast %c7_i32 : i32 to index
    %c0_59 = arith.constant 0 : index
    %204 = vector.load %arg3[%203, %c0_59] : memref<8x128xf32, #tpu.memory_space<vmem>>, vector<1x128xf32>
    tpu.vector_store %arg3[%203, %c0_59], %202 {strides = array<i32>} : memref<8x128xf32, #tpu.memory_space<vmem>>, vector<1x128xf32>,
    %c8_i32 = arith.constant 8 : i32
    %c0_60 = arith.constant 0 : index
    %c0_61 = arith.constant 0 : index
    %205 = vector.load %arg4[%c0_60, %c0_61] : memref<1x128xf32, #tpu.memory_space<vmem>>, vector<1x128xf32>
    tpu.vector_store %arg4[%c0_60, %c0_61], %202 {strides = array<i32>} : memref<1x128xf32, #tpu.memory_space<vmem>>, vector<1x128xf32>,
    %c0_62 = arith.constant 0 : index
    %c0_63 = arith.constant 0 : index
    %206 = vector.load %arg5[%c0_62, %c0_63] : memref<1x128xf32, #tpu.memory_space<vmem>>, vector<1x128xf32>
    tpu.vector_store %arg5[%c0_62, %c0_63], %199 {strides = array<i32>} : memref<1x128xf32, #tpu.memory_space<vmem>>, vector<1x128xf32>,
    return
  }
  func.func @transform_0(%arg0: i32) -> (i32, i32) {
    %c0_i32 = arith.constant 0 : i32
    %c0_i32_0 = arith.constant 0 : i32
    return %arg0, %c0_i32 : i32, i32
  }
  func.func @transform_1(%arg0: i32) -> (i32, i32) {
    %c0_i32 = arith.constant 0 : i32
    %c0_i32_0 = arith.constant 0 : i32
    %c0_i32_1 = arith.constant 0 : i32
    return %c0_i32, %c0_i32_0 : i32, i32
  }
  func.func @transform_2(%arg0: i32) -> (i32, i32) {
    %c0_i32 = arith.constant 0 : i32
    %c0_i32_0 = arith.constant 0 : i32
    return %arg0, %c0_i32 : i32, i32
  }
}

</mosaic_0001>

<bundles_post_ra>
// kernel: lstm_forward.1
= control target key start
LH: loop header
LB: loop body
LE: loop exit
PB: predicated region body
PF: predicated region fallthrough
CT: control target
= control target key end

     0   :  { %v3067_v1 = vmov 0   ;;  %v3068_v2 = vmov 0.0   ;;  %v3069_v36 = vmov 1966171168   ;;  %v305_v38 = vlaneseq  ;;  %s3775_s1 = inlined_call_operand.vmem [shape: bf16[128,512], index: 1, kind: input, shape index: {}]   ;;  %s3776_s0 = inlined_call_operand.vmem [shape: f32[8,512], index: 0, kind: input, shape index: {}]   ;;  %s3777_s2 = inlined_call_operand.vmem [shape: f32[8,128], index: 2, kind: output, shape index: {}]  }
   0x1   :  { %v3088_v0 = vld [vmem:[%s3775_s1 + $0xe4] ss:$16 sps:$4 sm:$0xff]   ;;  %245 = vmatprep.mubr.bf16.mxu0 %v3067_v1  ;;  %286 = vmatprep.mubr.bf16.mxu1 %v3067_v1  ;;  %16 = vst [vmem:[#allocation2] sm:$0x1] %v3068_v2  ;;  %17 = vst [vmem:[#allocation3] sm:$0x1] %v3068_v2  ;;  %v303_v37 = vunpack.c.l.s4 %v3069_v36 }
   0x2   :  { %v3095_v3 = vld [vmem:[%s3775_s1 + $0xec] ss:$16 sps:$4 sm:$0xff]   ;;  %213 = vmatprep.subr.bf16.mxu0 %v3088_v0  ;;  %v3101_v4 = vld [vmem:[%s3775_s1 + $0xe0] ss:$16 sps:$4 sm:$0xff]   ;;  %v3106_v5 = vld [vmem:[%s3775_s1 + $0xe8] ss:$16 sps:$4 sm:$0xff]  }
   0x3   :  { %254 = vmatprep.subr.bf16.mxu1 %v3095_v3  ;;  %v3112_v6 = vld [vmem:[%s3775_s1 + $0xc4] ss:$16 sps:$4 sm:$0xff]   ;;  %214 = vmatpush1.bf16.msra.mxu0 %v3101_v4  ;;  %v3119_v7 = vld [vmem:[%s3775_s1 + $0xcc] ss:$16 sps:$4 sm:$0xff]   ;;  %v3124_v8 = vld [vmem:[%s3775_s1 + $0xc0] ss:$16 sps:$4 sm:$0xff]   ;;  %v304_v39 = vunpack.c.0.s8 %v303_v37 }
   0x4   :  { %255 = vmatpush1.bf16.msra.mxu1 %v3106_v5  ;;  %215 = vmatprep.subr.bf16.mxu0 %v3112_v6  ;;  %v3130_v9 = vld [vmem:[%s3775_s1 + $0xc8] ss:$16 sps:$4 sm:$0xff]   ;;  %v3136_v10 = vld [vmem:[%s3775_s1 + $0xa4] ss:$16 sps:$4 sm:$0xff]   ;;  %v3141_v11 = vld [vmem:[%s3775_s1 + $0xac] ss:$16 sps:$4 sm:$0xff]  }
   0x5   :  { %256 = vmatprep.subr.bf16.mxu1 %v3119_v7  ;;  %v3146_v12 = vld [vmem:[%s3775_s1 + $0xa0] ss:$16 sps:$4 sm:$0xff]   ;;  %v3151_v13 = vld [vmem:[%s3775_s1 + $0xa8] ss:$16 sps:$4 sm:$0xff]   ;;  %v3158_v14 = vld [vmem:[%s3775_s1 + $0x84] ss:$16 sps:$4 sm:$0xff]  }
   0x6   :  { %v3165_v15 = vld [vmem:[%s3775_s1 + $0x8c] ss:$16 sps:$4 sm:$0xff]   ;;  %v3170_v16 = vld [vmem:[%s3775_s1 + $0x80] ss:$16 sps:$4 sm:$0xff]   ;;  %v3177_v17 = vld [vmem:[%s3775_s1 + $0x88] ss:$16 sps:$4 sm:$0xff]  }
   0x7   :  { %216 = vmatpush1.bf16.msra.mxu0 %v3124_v8  ;;  %v3182_v18 = vld [vmem:[%s3775_s1 + $0x64] ss:$16 sps:$4 sm:$0xff]   ;;  %v3189_v19 = vld [vmem:[%s3775_s1 + $0x6c] ss:$16 sps:$4 sm:$0xff]   ;;  %v3194_v20 = vld [vmem:[%s3775_s1 + $0x60] ss:$16 sps:$4 sm:$0xff]  }
   0x8   :  { %257 = vmatpush1.bf16.msra.mxu1 %v3130_v9  ;;  %217 = vmatprep.subr.bf16.mxu0 %v3136_v10  ;;  %v3199_v21 = vld [vmem:[%s3775_s1 + $0x68] ss:$16 sps:$4 sm:$0xff]   ;;  %v3206_v22 = vld [vmem:[%s3775_s1 + $0x44] ss:$16 sps:$4 sm:$0xff]   ;;  %v3213_v23 = vld [vmem:[%s3775_s1 + $0x4c] ss:$16 sps:$4 sm:$0xff]  }
   0x9   :  { %258 = vmatprep.subr.bf16.mxu1 %v3141_v11  ;;  %v3220_v24 = vld [vmem:[%s3775_s1 + $0x40] ss:$16 sps:$4 sm:$0xff]   ;;  %v3225_v25 = vld [vmem:[%s3775_s1 + $0x48] ss:$16 sps:$4 sm:$0xff]   ;;  %v3232_v26 = vld [vmem:[%s3775_s1 + $0x24] ss:$16 sps:$4 sm:$0xff]  }
   0xa   :  { %v3237_v27 = vld [vmem:[%s3775_s1 + $0x2c] ss:$16 sps:$4 sm:$0xff]   ;;  %v3242_v28 = vld [vmem:[%s3775_s1 + $0x20] ss:$16 sps:$4 sm:$0xff]   ;;  %v3247_v29 = vld [vmem:[%s3775_s1 + $0x28] ss:$16 sps:$4 sm:$0xff]  }
   0xb   :  { %218 = vmatpush1.bf16.msra.mxu0 %v3146_v12  ;;  %v3252_v30 = vld [vmem:[%s3775_s1 + $0x4] ss:$16 sps:$4 sm:$0xff]   ;;  %v3257_v31 = vld [vmem:[%s3775_s1 + $0xc] ss:$16 sps:$4 sm:$0xff]   ;;  %v3266_v32 = vld [vmem:[%s3775_s1] ss:$16 sps:$4 sm:$0xff]  }
   0xc   :  { %259 = vmatpush1.bf16.msra.mxu1 %v3151_v13  ;;  %219 = vmatprep.subr.bf16.mxu0 %v3158_v14  ;;  %v3271_v33 = vld [vmem:[%s3775_s1 + $0x8] ss:$16 sps:$4 sm:$0xff]   ;;  %v18_v34 = vld [vmem:[#allocation2] sm:$0x1]  ;;  %v306_v40 = vshrl.u32 %v305_v38, 7 }
   0xd   :  { %260 = vmatprep.subr.bf16.mxu1 %v3165_v15  ;;  %v20_v35 = vpack.c.bf16 %v18_v34, %v18_v34  ;;  %v295_v55 = vld [vmem:[%s3776_s0] ss:$8 sm:$0xf]  ;;  %v19_v63 = vld [vmem:[#allocation3] sm:$0x1] }
   0xe   :  { %v3315_v43 = vsub.s32 %v304_v39, %v306_v40 }
   0xf   :  { %220 = vmatpush1.bf16.msra.mxu0 %v3170_v16 }
  0x10   :  { %261 = vmatpush1.bf16.msra.mxu1 %v3177_v17  ;;  %221 = vmatprep.subr.bf16.mxu0 %v3182_v18 }
  0x11   :  { %262 = vmatprep.subr.bf16.mxu1 %v3189_v19 }
  0x13   :  { %222 = vmatpush1.bf16.msra.mxu0 %v3194_v20 }
  0x14   :  { %263 = vmatpush1.bf16.msra.mxu1 %v3199_v21  ;;  %223 = vmatprep.subr.bf16.mxu0 %v3206_v22 }
  0x15   :  { %264 = vmatprep.subr.bf16.mxu1 %v3213_v23 }
  0x17   :  { %224 = vmatpush1.bf16.msra.mxu0 %v3220_v24 }
  0x18   :  { %265 = vmatpush1.bf16.msra.mxu1 %v3225_v25  ;;  %225 = vmatprep.subr.bf16.mxu0 %v3232_v26 }
  0x19   :  { %266 = vmatprep.subr.bf16.mxu1 %v3237_v27 }
  0x1b   :  { %226 = vmatpush1.bf16.msra.mxu0 %v3242_v28 }
  0x1c   :  { %267 = vmatpush1.bf16.msra.mxu1 %v3247_v29  ;;  %227 = vmatprep.subr.bf16.mxu0 %v3252_v30 }
  0x1d   :  { %268 = vmatprep.subr.bf16.mxu1 %v3257_v31 }
  0x1f   :  { %228 = vmatpush1.bf16.msra.mxu0 %v3266_v32 }
  0x20   :  { %269 = vmatpush1.bf16.msra.mxu1 %v3271_v33  ;;  %540 = vmatprep.subr.bf16.mxu0 %v3088_v0 }
  0x21   :  { %581 = vmatprep.subr.bf16.mxu1 %v3095_v3 }
  0x22   :  { %246 = vmatmul.mubr.bf16.vlgmr.msra.gmra.mxu0 %v20_v35 }
  0x23   :  { %287 = vmatmul.mubr.bf16.vlgmr.msra.gmra.mxu1 %v20_v35  ;;  %541 = vmatpush1.bf16.msra.mxu0 %v3101_v4 }
  0x24   :  { %582 = vmatpush1.bf16.msra.mxu1 %v3106_v5  ;;  %542 = vmatprep.subr.bf16.mxu0 %v3112_v6 }
  0x25   :  { %583 = vmatprep.subr.bf16.mxu1 %v3119_v7  ;;  %572 = vmatprep.mubr.bf16.mxu0 %v3067_v1 }
  0x26   :  { %613 = vmatprep.mubr.bf16.mxu1 %v3067_v1 }
  0x27   :  { %543 = vmatpush1.bf16.msra.mxu0 %v3124_v8 }
  0x28   :  { %584 = vmatpush1.bf16.msra.mxu1 %v3130_v9  ;;  %544 = vmatprep.subr.bf16.mxu0 %v3136_v10 }
  0x29   :  { %585 = vmatprep.subr.bf16.mxu1 %v3141_v11 }
  0x2b   :  { %545 = vmatpush1.bf16.msra.mxu0 %v3146_v12 }
  0x2c   :  { %586 = vmatpush1.bf16.msra.mxu1 %v3151_v13  ;;  %546 = vmatprep.subr.bf16.mxu0 %v3158_v14 }
  0x2d   :  { %587 = vmatprep.subr.bf16.mxu1 %v3165_v15 }
  0x2f   :  { %547 = vmatpush1.bf16.msra.mxu0 %v3170_v16 }
  0x30   :  { %588 = vmatpush1.bf16.msra.mxu1 %v3177_v17  ;;  %548 = vmatprep.subr.bf16.mxu0 %v3182_v18 }
  0x31   :  { %589 = vmatprep.subr.bf16.mxu1 %v3189_v19 }
  0x33   :  { %549 = vmatpush1.bf16.msra.mxu0 %v3194_v20 }
  0x34   :  { %590 = vmatpush1.bf16.msra.mxu1 %v3199_v21  ;;  %550 = vmatprep.subr.bf16.mxu0 %v3206_v22 }
  0x35   :  { %591 = vmatprep.subr.bf16.mxu1 %v3213_v23 }
  0x37   :  { %551 = vmatpush1.bf16.msra.mxu0 %v3220_v24 }
  0x38   :  { %592 = vmatpush1.bf16.msra.mxu1 %v3225_v25  ;;  %552 = vmatprep.subr.bf16.mxu0 %v3232_v26 }
  0x39   :  { %593 = vmatprep.subr.bf16.mxu1 %v3237_v27 }
  0x3b   :  { %553 = vmatpush1.bf16.msra.mxu0 %v3242_v28 }
  0x3c   :  { %594 = vmatpush1.bf16.msra.mxu1 %v3247_v29  ;;  %554 = vmatprep.subr.bf16.mxu0 %v3252_v30 }
  0x3d   :  { %595 = vmatprep.subr.bf16.mxu1 %v3257_v31 }
  0x3f   :  { %555 = vmatpush1.bf16.msra.mxu0 %v3266_v32 }
  0x40   :  { %596 = vmatpush1.bf16.msra.mxu1 %v3271_v33  ;;  %868 = vmatprep.subr.bf16.mxu0 %v3088_v0 }
  0x41   :  { %909 = vmatprep.subr.bf16.mxu1 %v3095_v3 }
  0xe2   :  { %v247_v41 = vpop.f32.mrf.mxu0 }
  0xe3   :  { %v288_v42 = vpop.f32.mrf.mxu1 }
  0xe4   :  { %v249_v44 = vpop.f32.mrf.mxu0 }
  0xe5   :  { %v290_v45 = vpop.f32.mrf.mxu1  ;;  %v300_v46 = vcombine.low %v247_v41, %v249_v44 }
  0xe6   :  { %v301_v47 = vcombine.low %v288_v42, %v290_v45  ;;  %v251_v48 = vpop.f32.mrf.mxu0 }
  0xe7   :  { %v292_v49 = vpop.f32.mrf.mxu1  ;;  %v308_v50 = vrot.slane %v300_v46, %v3315_v43 }
  0xe8   :  { %v315_v51 = vrot.slane %v301_v47, %v3315_v43  ;;  %v252_v52 = vpop.f32.mrf.mxu0 }
  0xe9   :  { %v293_v53 = vpop.f32.mrf.mxu1 }
  0xea   :  { %v316_v54 = vcombine.low %v308_v50, %v315_v51 }
  0xec   :  { %v323_v56 = vrot.slane %v316_v54, %v3315_v43 }
  0xee   :  { %v325_v57 = vadd.f32 %v323_v56, %v295_v55 }
  0xf0   :  { %v2681_v58 = vmul.f32 -1.442695, %v325_v57  ;;  %v333_v61 = vrot.slane %v325_v57, 3 }
  0xf2   :  { %3019 = vpow2.f32 %v2681_v58 }
  0xff   :  { %v3020_v59 = vpop.eup %3019 }
 0x100   :  { %v329_v60 = vadd.f32 1.0, %v3020_v59 }
 0x102   :  { %3021 = vrcp.f32 %v329_v60 }
 0x103   :  { %3023 = vtanh.f32 %v333_v61 }
 0x10f   :  { %v3022_v62 = vpop.eup %3021 }
 0x110   :  { %v337_v2 = vrot.slane %v3022_v62, 1  ;;  %v3024_v34 = vpop.eup %3023  ;;  %v343_v39 = vrot.slane %v3022_v62, 2 }
 0x111   :  { %v340_v36 = vmul.f32 %v3024_v34, %v3022_v62 }
 0x112   :  { %v339_v35 = vmul.f32 %v337_v2, %v19_v63 }
 0x114   :  { %v3323_v37 = vadd.f32 %v340_v36, %v339_v35 }
 0x116   :  { %v342_v38 = vmax.f32 %v3323_v37, 0.0 }
 0x118   :  { %v345_v40 = vmul.f32 %v343_v39, %v342_v38 }
 0x11a   :  { %346 = vst [vmem:[%s3777_s2] sm:$0x1] %v345_v40  ;;  %v347_v41 = vpack.c.bf16 %v345_v40, %v345_v40 }
 0x11c   :  { %573 = vmatmul.mubr.bf16.vlgmr.msra.gmra.mxu0 %v347_v41  ;;  %614 = vmatmul.mubr.bf16.vlgmr.msra.gmra.mxu1 %v347_v41  ;;  %v3431_v41 = vld [vmem:[%s3775_s1 + $0xec] ss:$16 sps:$4 sm:$0xff]  }
 0x11d   :  { %869 = vmatpush1.bf16.msra.mxu0 %v3101_v4  ;;  %910 = vmatpush1.bf16.msra.mxu1 %v3106_v5 }
 0x11e   :  { %870 = vmatprep.subr.bf16.mxu0 %v3112_v6  ;;  %911 = vmatprep.subr.bf16.mxu1 %v3119_v7 }
 0x11f   :  { %900 = vmatprep.mubr.bf16.mxu0 %v3067_v1  ;;  %941 = vmatprep.mubr.bf16.mxu1 %v3067_v1 }
 0x121   :  { %871 = vmatpush1.bf16.msra.mxu0 %v3124_v8  ;;  %912 = vmatpush1.bf16.msra.mxu1 %v3130_v9 }
 0x122   :  { %872 = vmatprep.subr.bf16.mxu0 %v3136_v10  ;;  %913 = vmatprep.subr.bf16.mxu1 %v3141_v11 }
 0x125   :  { %873 = vmatpush1.bf16.msra.mxu0 %v3146_v12  ;;  %914 = vmatpush1.bf16.msra.mxu1 %v3151_v13 }
 0x126   :  { %874 = vmatprep.subr.bf16.mxu0 %v3158_v14  ;;  %915 = vmatprep.subr.bf16.mxu1 %v3165_v15 }
 0x129   :  { %875 = vmatpush1.bf16.msra.mxu0 %v3170_v16  ;;  %916 = vmatpush1.bf16.msra.mxu1 %v3177_v17 }
 0x12a   :  { %876 = vmatprep.subr.bf16.mxu0 %v3182_v18  ;;  %917 = vmatprep.subr.bf16.mxu1 %v3189_v19 }
 0x12d   :  { %877 = vmatpush1.bf16.msra.mxu0 %v3194_v20  ;;  %918 = vmatpush1.bf16.msra.mxu1 %v3199_v21 }
 0x12e   :  { %878 = vmatprep.subr.bf16.mxu0 %v3206_v22  ;;  %919 = vmatprep.subr.bf16.mxu1 %v3213_v23 }
 0x131   :  { %879 = vmatpush1.bf16.msra.mxu0 %v3220_v24  ;;  %920 = vmatpush1.bf16.msra.mxu1 %v3225_v25 }
 0x132   :  { %880 = vmatprep.subr.bf16.mxu0 %v3232_v26  ;;  %921 = vmatprep.subr.bf16.mxu1 %v3237_v27 }
 0x135   :  { %881 = vmatpush1.bf16.msra.mxu0 %v3242_v28  ;;  %922 = vmatpush1.bf16.msra.mxu1 %v3247_v29 }
 0x136   :  { %882 = vmatprep.subr.bf16.mxu0 %v3252_v30  ;;  %923 = vmatprep.subr.bf16.mxu1 %v3257_v31 }
 0x139   :  { %883 = vmatpush1.bf16.msra.mxu0 %v3266_v32  ;;  %924 = vmatpush1.bf16.msra.mxu1 %v3271_v33 }
 0x13a   :  { %1196 = vmatprep.subr.bf16.mxu0 %v3088_v0  ;;  %1237 = vmatprep.subr.bf16.mxu1 %v3095_v3  ;;  %v2714_v0 = vld [vmem:[%s3776_s0 + $0x1] ss:$8 sm:$0xf] }
 0x1dc   :  { %v574_v42 = vpop.f32.mrf.mxu0  ;;  %v615_v44 = vpop.f32.mrf.mxu1 }
 0x1de   :  { %v576_v45 = vpop.f32.mrf.mxu0  ;;  %v617_v46 = vpop.f32.mrf.mxu1 }
 0x1df   :  { %v628_v47 = vcombine.low %v574_v42, %v576_v45  ;;  %v629_v48 = vcombine.low %v615_v44, %v617_v46  ;;  %v3436_v42 = vld [vmem:[%s3775_s1 + $0xe0] ss:$16 sps:$4 sm:$0xff]   ;;  %v3441_v44 = vld [vmem:[%s3775_s1 + $0xe8] ss:$16 sps:$4 sm:$0xff]   ;;  %v3450_v45 = vld [vmem:[%s3775_s1 + $0xc4] ss:$16 sps:$4 sm:$0xff]  }
 0x1e0   :  { %v578_v49 = vpop.f32.mrf.mxu0  ;;  %v619_v50 = vpop.f32.mrf.mxu1  ;;  %v3455_v46 = vld [vmem:[%s3775_s1 + $0xcc] ss:$16 sps:$4 sm:$0xff]  }
 0x1e1   :  { %v636_v51 = vrot.slane %v628_v47, %v3315_v43  ;;  %v643_v52 = vrot.slane %v629_v48, %v3315_v43  ;;  %v3460_v47 = vld [vmem:[%s3775_s1 + $0xc0] ss:$16 sps:$4 sm:$0xff]   ;;  %v3465_v48 = vld [vmem:[%s3775_s1 + $0xc8] ss:$16 sps:$4 sm:$0xff]   ;;  %v3479_v50 = vld [vmem:[%s3775_s1 + $0xa4] ss:$16 sps:$4 sm:$0xff]  }
 0x1e2   :  { %v579_v53 = vpop.f32.mrf.mxu0  ;;  %v620_v54 = vpop.f32.mrf.mxu1  ;;  %v3474_v49 = vld [vmem:[%s3775_s1 + $0xa0] ss:$16 sps:$4 sm:$0xff]  }
 0x1e3   :  { %v644_v55 = vcombine.low %v636_v51, %v643_v52  ;;  %v3484_v51 = vld [vmem:[%s3775_s1 + $0xa8] ss:$16 sps:$4 sm:$0xff]   ;;  %v3489_v52 = vld [vmem:[%s3775_s1 + $0xac] ss:$16 sps:$4 sm:$0xff]   ;;  %v3494_v53 = vld [vmem:[%s3775_s1 + $0x84] ss:$16 sps:$4 sm:$0xff]  }
 0x1e4   :  { %v3500_v54 = vld [vmem:[%s3775_s1 + $0x8c] ss:$16 sps:$4 sm:$0xff]  }
 0x1e5   :  { %v651_v3 = vrot.slane %v644_v55, %v3315_v43  ;;  %v3508_v55 = vld [vmem:[%s3775_s1 + $0x80] ss:$16 sps:$4 sm:$0xff]  }
 0x1e7   :  { %v653_v56 = vadd.f32 %v2714_v0, %v651_v3  ;;  %v3513_v0 = vld [vmem:[%s3775_s1 + $0x88] ss:$16 sps:$4 sm:$0xff]   ;;  %v3520_v3 = vld [vmem:[%s3775_s1 + $0x64] ss:$16 sps:$4 sm:$0xff]  }
 0x1e9   :  { %v2715_v57 = vmul.f32 -1.442695, %v653_v56  ;;  %v661_v60 = vrot.slane %v653_v56, 3  ;;  %v3525_v56 = vld [vmem:[%s3775_s1 + $0x6c] ss:$16 sps:$4 sm:$0xff]  }
 0x1eb   :  { %3025 = vpow2.f32 %v2715_v57  ;;  %v3532_v57 = vld [vmem:[%s3775_s1 + $0x60] ss:$16 sps:$4 sm:$0xff]  }
 0x1f8   :  { %v3026_v58 = vpop.eup %3025 }
 0x1f9   :  { %v657_v59 = vadd.f32 1.0, %v3026_v58  ;;  %v3537_v58 = vld [vmem:[%s3775_s1 + $0x68] ss:$16 sps:$4 sm:$0xff]  }
 0x1fb   :  { %3027 = vrcp.f32 %v657_v59  ;;  %v3544_v59 = vld [vmem:[%s3775_s1 + $0x44] ss:$16 sps:$4 sm:$0xff]  }
 0x1fc   :  { %3029 = vtanh.f32 %v661_v60  ;;  %v3549_v60 = vld [vmem:[%s3775_s1 + $0x4c] ss:$16 sps:$4 sm:$0xff]  }
 0x208   :  { %v3028_v61 = vpop.eup %3027 }
 0x209   :  { %v665_v62 = vrot.slane %v3028_v61, 1  ;;  %v3030_v63 = vpop.eup %3029  ;;  %v671_v38 = vrot.slane %v3028_v61, 2 }
 0x20a   :  { %v668_v34 = vmul.f32 %v3030_v63, %v3028_v61  ;;  %v3556_v61 = vld [vmem:[%s3775_s1 + $0x40] ss:$16 sps:$4 sm:$0xff]   ;;  %v3568_v63 = vld [vmem:[%s3775_s1 + $0x24] ss:$16 sps:$4 sm:$0xff]  }
 0x20b   :  { %v667_v2 = vmul.f32 %v665_v62, %v3323_v37  ;;  %v3426_v37 = vld [vmem:[%s3775_s1 + $0xe4] ss:$16 sps:$4 sm:$0xff]   ;;  %v3561_v62 = vld [vmem:[%s3775_s1 + $0x48] ss:$16 sps:$4 sm:$0xff]  }
 0x20d   :  { %v3370_v35 = vadd.f32 %v668_v34, %v667_v2  ;;  %v3573_v2 = vld [vmem:[%s3775_s1 + $0x2c] ss:$16 sps:$4 sm:$0xff]   ;;  %v3580_v34 = vld [vmem:[%s3775_s1 + $0x20] ss:$16 sps:$4 sm:$0xff]  }
 0x20f   :  { %v670_v36 = vmax.f32 %v3370_v35, 0.0 }
 0x211   :  { %v673_v39 = vmul.f32 %v671_v38, %v670_v36  ;;  %v3592_v36 = vld [vmem:[%s3775_s1 + $0x4] ss:$16 sps:$4 sm:$0xff]   ;;  %v3597_v38 = vld [vmem:[%s3775_s1 + $0xc] ss:$16 sps:$4 sm:$0xff]  }
 0x213   :  { %674 = vst [vmem:[%s3777_s2 + $0x1] sm:$0x1] %v673_v39  ;;  %v675_v40 = vpack.c.bf16 %v673_v39, %v673_v39  ;;  %v3604_v39 = vld [vmem:[%s3775_s1] ss:$16 sps:$4 sm:$0xff]  }
 0x215   :  { %901 = vmatmul.mubr.bf16.vlgmr.msra.gmra.mxu0 %v675_v40  ;;  %942 = vmatmul.mubr.bf16.vlgmr.msra.gmra.mxu1 %v675_v40  ;;  %v3609_v40 = vld [vmem:[%s3775_s1 + $0x8] ss:$16 sps:$4 sm:$0xff]  }
 0x216   :  { %1197 = vmatpush1.bf16.msra.mxu0 %v3101_v4  ;;  %1238 = vmatpush1.bf16.msra.mxu1 %v3106_v5 }
 0x217   :  { %1198 = vmatprep.subr.bf16.mxu0 %v3112_v6  ;;  %1239 = vmatprep.subr.bf16.mxu1 %v3119_v7 }
 0x218   :  { %1228 = vmatprep.mubr.bf16.mxu0 %v3067_v1  ;;  %1269 = vmatprep.mubr.bf16.mxu1 %v3067_v1 }
 0x21a   :  { %1199 = vmatpush1.bf16.msra.mxu0 %v3124_v8  ;;  %1240 = vmatpush1.bf16.msra.mxu1 %v3130_v9 }
 0x21b   :  { %1200 = vmatprep.subr.bf16.mxu0 %v3136_v10  ;;  %1241 = vmatprep.subr.bf16.mxu1 %v3141_v11 }
 0x21e   :  { %1201 = vmatpush1.bf16.msra.mxu0 %v3146_v12  ;;  %1242 = vmatpush1.bf16.msra.mxu1 %v3151_v13 }
 0x21f   :  { %1202 = vmatprep.subr.bf16.mxu0 %v3158_v14  ;;  %1243 = vmatprep.subr.bf16.mxu1 %v3165_v15 }
 0x222   :  { %1203 = vmatpush1.bf16.msra.mxu0 %v3170_v16  ;;  %1244 = vmatpush1.bf16.msra.mxu1 %v3177_v17  ;;  %v2748_v17 = vld [vmem:[%s3776_s0 + $0x2] ss:$8 sm:$0xf] }
 0x223   :  { %1204 = vmatprep.subr.bf16.mxu0 %v3182_v18  ;;  %1245 = vmatprep.subr.bf16.mxu1 %v3189_v19 }
 0x226   :  { %1205 = vmatpush1.bf16.msra.mxu0 %v3194_v20  ;;  %1246 = vmatpush1.bf16.msra.mxu1 %v3199_v21 }
 0x227   :  { %1206 = vmatprep.subr.bf16.mxu0 %v3206_v22  ;;  %1247 = vmatprep.subr.bf16.mxu1 %v3213_v23 }
 0x22a   :  { %1207 = vmatpush1.bf16.msra.mxu0 %v3220_v24  ;;  %1248 = vmatpush1.bf16.msra.mxu1 %v3225_v25 }
 0x22b   :  { %1208 = vmatprep.subr.bf16.mxu0 %v3232_v26  ;;  %1249 = vmatprep.subr.bf16.mxu1 %v3237_v27 }
 0x22e   :  { %1209 = vmatpush1.bf16.msra.mxu0 %v3242_v28  ;;  %1250 = vmatpush1.bf16.msra.mxu1 %v3247_v29 }
 0x22f   :  { %1210 = vmatprep.subr.bf16.mxu0 %v3252_v30  ;;  %1251 = vmatprep.subr.bf16.mxu1 %v3257_v31 }
 0x232   :  { %1211 = vmatpush1.bf16.msra.mxu0 %v3266_v32  ;;  %1252 = vmatpush1.bf16.msra.mxu1 %v3271_v33 }
 0x233   :  { %1524 = vmatprep.subr.bf16.mxu0 %v3426_v37  ;;  %1565 = vmatprep.subr.bf16.mxu1 %v3431_v41 }
 0x2d5   :  { %v902_v4 = vpop.f32.mrf.mxu0  ;;  %v943_v5 = vpop.f32.mrf.mxu1 }
 0x2d7   :  { %v904_v6 = vpop.f32.mrf.mxu0  ;;  %v945_v7 = vpop.f32.mrf.mxu1 }
 0x2d8   :  { %v956_v8 = vcombine.low %v902_v4, %v904_v6  ;;  %v957_v9 = vcombine.low %v943_v5, %v945_v7 }
 0x2d9   :  { %v906_v10 = vpop.f32.mrf.mxu0  ;;  %v947_v11 = vpop.f32.mrf.mxu1 }
 0x2da   :  { %v964_v12 = vrot.slane %v956_v8, %v3315_v43  ;;  %v971_v13 = vrot.slane %v957_v9, %v3315_v43 }
 0x2db   :  { %v907_v14 = vpop.f32.mrf.mxu0  ;;  %v948_v15 = vpop.f32.mrf.mxu1 }
 0x2dc   :  { %v972_v16 = vcombine.low %v964_v12, %v971_v13 }
 0x2de   :  { %v979_v18 = vrot.slane %v972_v16, %v3315_v43 }
 0x2e0   :  { %v981_v19 = vadd.f32 %v2748_v17, %v979_v18  ;;  %v2782_v17 = vld [vmem:[%s3776_s0 + $0x3] ss:$8 sm:$0xf] }
 0x2e2   :  { %v2749_v20 = vmul.f32 -1.442695, %v981_v19  ;;  %v989_v23 = vrot.slane %v981_v19, 3 }
 0x2e4   :  { %3031 = vpow2.f32 %v2749_v20 }
 0x2f1   :  { %v3032_v21 = vpop.eup %3031 }
 0x2f2   :  { %v985_v22 = vadd.f32 1.0, %v3032_v21 }
 0x2f4   :  { %3033 = vrcp.f32 %v985_v22 }
 0x2f5   :  { %3035 = vtanh.f32 %v989_v23 }
 0x301   :  { %v3034_v24 = vpop.eup %3033 }
 0x302   :  { %v993_v25 = vrot.slane %v3034_v24, 1  ;;  %v3036_v26 = vpop.eup %3035  ;;  %v999_v31 = vrot.slane %v3034_v24, 2 }
 0x303   :  { %v996_v28 = vmul.f32 %v3036_v26, %v3034_v24 }
 0x304   :  { %v995_v27 = vmul.f32 %v993_v25, %v3370_v35  ;;  %v3585_v35 = vld [vmem:[%s3775_s1 + $0x28] ss:$16 sps:$4 sm:$0xff]  }
 0x306   :  { %v3415_v29 = vadd.f32 %v996_v28, %v995_v27 }
 0x308   :  { %v998_v30 = vmax.f32 %v3415_v29, 0.0 }
 0x30a   :  { %v1001_v32 = vmul.f32 %v999_v31, %v998_v30 }
 0x30c   :  { %1002 = vst [vmem:[%s3777_s2 + $0x2] sm:$0x1] %v1001_v32  ;;  %v1003_v33 = vpack.c.bf16 %v1001_v32, %v1001_v32 }
 0x30e   :  { %1229 = vmatmul.mubr.bf16.vlgmr.msra.gmra.mxu0 %v1003_v33  ;;  %1270 = vmatmul.mubr.bf16.vlgmr.msra.gmra.mxu1 %v1003_v33 }
 0x30f   :  { %1556 = vmatprep.mubr.bf16.mxu0 %v3067_v1  ;;  %1597 = vmatprep.mubr.bf16.mxu1 %v3067_v1 }
 0x310   :  { %1525 = vmatpush1.bf16.msra.mxu0 %v3436_v42  ;;  %1566 = vmatpush1.bf16.msra.mxu1 %v3441_v44 }
 0x311   :  { %1526 = vmatprep.subr.bf16.mxu0 %v3450_v45  ;;  %1567 = vmatprep.subr.bf16.mxu1 %v3455_v46 }
 0x314   :  { %1527 = vmatpush1.bf16.msra.mxu0 %v3460_v47  ;;  %1568 = vmatpush1.bf16.msra.mxu1 %v3465_v48 }
 0x315   :  { %1528 = vmatprep.subr.bf16.mxu0 %v3479_v50  ;;  %1569 = vmatprep.subr.bf16.mxu1 %v3489_v52 }
 0x318   :  { %1529 = vmatpush1.bf16.msra.mxu0 %v3474_v49  ;;  %1570 = vmatpush1.bf16.msra.mxu1 %v3484_v51 }
 0x319   :  { %1530 = vmatprep.subr.bf16.mxu0 %v3494_v53  ;;  %1571 = vmatprep.subr.bf16.mxu1 %v3500_v54 }
 0x31c   :  { %1531 = vmatpush1.bf16.msra.mxu0 %v3508_v55  ;;  %1572 = vmatpush1.bf16.msra.mxu1 %v3513_v0 }
 0x31d   :  { %1532 = vmatprep.subr.bf16.mxu0 %v3520_v3  ;;  %1573 = vmatprep.subr.bf16.mxu1 %v3525_v56 }
 0x320   :  { %1533 = vmatpush1.bf16.msra.mxu0 %v3532_v57  ;;  %1574 = vmatpush1.bf16.msra.mxu1 %v3537_v58 }
 0x321   :  { %1534 = vmatprep.subr.bf16.mxu0 %v3544_v59  ;;  %1575 = vmatprep.subr.bf16.mxu1 %v3549_v60 }
 0x324   :  { %1535 = vmatpush1.bf16.msra.mxu0 %v3556_v61  ;;  %1576 = vmatpush1.bf16.msra.mxu1 %v3561_v62 }
 0x325   :  { %1536 = vmatprep.subr.bf16.mxu0 %v3568_v63  ;;  %1577 = vmatprep.subr.bf16.mxu1 %v3573_v2 }
 0x328   :  { %1537 = vmatpush1.bf16.msra.mxu0 %v3580_v34  ;;  %1578 = vmatpush1.bf16.msra.mxu1 %v3585_v35 }
 0x329   :  { %1538 = vmatprep.subr.bf16.mxu0 %v3592_v36  ;;  %1579 = vmatprep.subr.bf16.mxu1 %v3597_v38 }
 0x32c   :  { %1539 = vmatpush1.bf16.msra.mxu0 %v3604_v39  ;;  %1580 = vmatpush1.bf16.msra.mxu1 %v3609_v40 }
 0x32d   :  { %1852 = vmatprep.subr.bf16.mxu0 %v3426_v37  ;;  %1893 = vmatprep.subr.bf16.mxu1 %v3431_v41 }
 0x3ce   :  { %v1230_v4 = vpop.f32.mrf.mxu0  ;;  %v1271_v5 = vpop.f32.mrf.mxu1 }
 0x3d0   :  { %v1232_v6 = vpop.f32.mrf.mxu0  ;;  %v1273_v7 = vpop.f32.mrf.mxu1 }
 0x3d1   :  { %v1284_v8 = vcombine.low %v1230_v4, %v1232_v6  ;;  %v1285_v9 = vcombine.low %v1271_v5, %v1273_v7 }
 0x3d2   :  { %v1234_v10 = vpop.f32.mrf.mxu0  ;;  %v1275_v11 = vpop.f32.mrf.mxu1 }
 0x3d3   :  { %v1292_v12 = vrot.slane %v1284_v8, %v3315_v43  ;;  %v1299_v13 = vrot.slane %v1285_v9, %v3315_v43 }
 0x3d4   :  { %v1235_v14 = vpop.f32.mrf.mxu0  ;;  %v1276_v15 = vpop.f32.mrf.mxu1 }
 0x3d5   :  { %v1300_v16 = vcombine.low %v1292_v12, %v1299_v13 }
 0x3d7   :  { %v1307_v18 = vrot.slane %v1300_v16, %v3315_v43 }
 0x3d9   :  { %v1309_v19 = vadd.f32 %v2782_v17, %v1307_v18  ;;  %v2816_v17 = vld [vmem:[%s3776_s0 + $0x4] ss:$8 sm:$0xf] }
 0x3db   :  { %v2783_v20 = vmul.f32 -1.442695, %v1309_v19  ;;  %v1317_v23 = vrot.slane %v1309_v19, 3 }
 0x3dd   :  { %3037 = vpow2.f32 %v2783_v20 }
 0x3ea   :  { %v3038_v21 = vpop.eup %3037 }
 0x3eb   :  { %v1313_v22 = vadd.f32 1.0, %v3038_v21 }
 0x3ed   :  { %3039 = vrcp.f32 %v1313_v22 }
 0x3ee   :  { %3041 = vtanh.f32 %v1317_v23 }
 0x3fa   :  { %v3040_v24 = vpop.eup %3039 }
 0x3fb   :  { %v1321_v25 = vrot.slane %v3040_v24, 1  ;;  %v3042_v26 = vpop.eup %3041  ;;  %v1327_v32 = vrot.slane %v3040_v24, 2 }
 0x3fc   :  { %v1324_v28 = vmul.f32 %v3042_v26, %v3040_v24 }
 0x3fd   :  { %v1323_v27 = vmul.f32 %v1321_v25, %v3415_v29 }
 0x3ff   :  { %v3624_v30 = vadd.f32 %v1324_v28, %v1323_v27 }
 0x401   :  { %v1326_v31 = vmax.f32 %v3624_v30, 0.0 }
 0x403   :  { %v1329_v33 = vmul.f32 %v1327_v32, %v1326_v31 }
 0x405   :  { %1330 = vst [vmem:[%s3777_s2 + $0x3] sm:$0x1] %v1329_v33  ;;  %v1331_v4 = vpack.c.bf16 %v1329_v33, %v1329_v33 }
 0x407   :  { %1557 = vmatmul.mubr.bf16.vlgmr.msra.gmra.mxu0 %v1331_v4  ;;  %1598 = vmatmul.mubr.bf16.vlgmr.msra.gmra.mxu1 %v1331_v4 }
 0x408   :  { %1853 = vmatpush1.bf16.msra.mxu0 %v3436_v42  ;;  %1894 = vmatpush1.bf16.msra.mxu1 %v3441_v44 }
 0x409   :  { %1854 = vmatprep.subr.bf16.mxu0 %v3450_v45  ;;  %1895 = vmatprep.subr.bf16.mxu1 %v3455_v46 }
 0x40a   :  { %1884 = vmatprep.mubr.bf16.mxu0 %v3067_v1  ;;  %1925 = vmatprep.mubr.bf16.mxu1 %v3067_v1 }
 0x40c   :  { %1855 = vmatpush1.bf16.msra.mxu0 %v3460_v47  ;;  %1896 = vmatpush1.bf16.msra.mxu1 %v3465_v48 }
 0x40d   :  { %1856 = vmatprep.subr.bf16.mxu0 %v3479_v50  ;;  %1897 = vmatprep.subr.bf16.mxu1 %v3489_v52 }
 0x410   :  { %1857 = vmatpush1.bf16.msra.mxu0 %v3474_v49  ;;  %1898 = vmatpush1.bf16.msra.mxu1 %v3484_v51 }
 0x411   :  { %1858 = vmatprep.subr.bf16.mxu0 %v3494_v53  ;;  %1899 = vmatprep.subr.bf16.mxu1 %v3500_v54 }
 0x414   :  { %1859 = vmatpush1.bf16.msra.mxu0 %v3508_v55  ;;  %1900 = vmatpush1.bf16.msra.mxu1 %v3513_v0 }
 0x415   :  { %1860 = vmatprep.subr.bf16.mxu0 %v3520_v3  ;;  %1901 = vmatprep.subr.bf16.mxu1 %v3525_v56 }
 0x418   :  { %1861 = vmatpush1.bf16.msra.mxu0 %v3532_v57  ;;  %1902 = vmatpush1.bf16.msra.mxu1 %v3537_v58 }
 0x419   :  { %1862 = vmatprep.subr.bf16.mxu0 %v3544_v59  ;;  %1903 = vmatprep.subr.bf16.mxu1 %v3549_v60 }
 0x41c   :  { %1863 = vmatpush1.bf16.msra.mxu0 %v3556_v61  ;;  %1904 = vmatpush1.bf16.msra.mxu1 %v3561_v62 }
 0x41d   :  { %1864 = vmatprep.subr.bf16.mxu0 %v3568_v63  ;;  %1905 = vmatprep.subr.bf16.mxu1 %v3573_v2 }
 0x420   :  { %1865 = vmatpush1.bf16.msra.mxu0 %v3580_v34  ;;  %1906 = vmatpush1.bf16.msra.mxu1 %v3585_v35 }
 0x421   :  { %1866 = vmatprep.subr.bf16.mxu0 %v3592_v36  ;;  %1907 = vmatprep.subr.bf16.mxu1 %v3597_v38 }
 0x424   :  { %1867 = vmatpush1.bf16.msra.mxu0 %v3604_v39  ;;  %1908 = vmatpush1.bf16.msra.mxu1 %v3609_v40 }
 0x425   :  { %2180 = vmatprep.subr.bf16.mxu0 %v3426_v37  ;;  %2221 = vmatprep.subr.bf16.mxu1 %v3431_v41 }
 0x4c7   :  { %v1558_v29 = vpop.f32.mrf.mxu0  ;;  %v1599_v5 = vpop.f32.mrf.mxu1 }
 0x4c9   :  { %v1560_v6 = vpop.f32.mrf.mxu0  ;;  %v1601_v7 = vpop.f32.mrf.mxu1 }
 0x4ca   :  { %v1612_v8 = vcombine.low %v1558_v29, %v1560_v6  ;;  %v1613_v9 = vcombine.low %v1599_v5, %v1601_v7 }
 0x4cb   :  { %v1562_v10 = vpop.f32.mrf.mxu0  ;;  %v1603_v11 = vpop.f32.mrf.mxu1 }
 0x4cc   :  { %v1620_v12 = vrot.slane %v1612_v8, %v3315_v43  ;;  %v1627_v13 = vrot.slane %v1613_v9, %v3315_v43 }
 0x4cd   :  { %v1563_v14 = vpop.f32.mrf.mxu0  ;;  %v1604_v15 = vpop.f32.mrf.mxu1 }
 0x4ce   :  { %v1628_v16 = vcombine.low %v1620_v12, %v1627_v13 }
 0x4d0   :  { %v1635_v18 = vrot.slane %v1628_v16, %v3315_v43 }
 0x4d2   :  { %v1637_v19 = vadd.f32 %v2816_v17, %v1635_v18 }
 0x4d4   :  { %v2817_v20 = vmul.f32 -1.442695, %v1637_v19  ;;  %v1645_v23 = vrot.slane %v1637_v19, 3 }
 0x4d6   :  { %3043 = vpow2.f32 %v2817_v20 }
 0x4e3   :  { %v3044_v21 = vpop.eup %3043 }
 0x4e4   :  { %v1641_v22 = vadd.f32 1.0, %v3044_v21 }
 0x4e6   :  { %3045 = vrcp.f32 %v1641_v22 }
 0x4e7   :  { %3047 = vtanh.f32 %v1645_v23 }
 0x4f3   :  { %v3046_v24 = vpop.eup %3045 }
 0x4f4   :  { %v1649_v25 = vrot.slane %v3046_v24, 1  ;;  %v3048_v26 = vpop.eup %3047  ;;  %v1655_v33 = vrot.slane %v3046_v24, 2 }
 0x4f5   :  { %v1652_v28 = vmul.f32 %v3048_v26, %v3046_v24 }
 0x4f6   :  { %v1651_v27 = vmul.f32 %v1649_v25, %v3624_v30 }
 0x4f8   :  { %v3671_v31 = vadd.f32 %v1652_v28, %v1651_v27 }
 0x4fa   :  { %v1654_v32 = vmax.f32 %v3671_v31, 0.0 }
 0x4fc   :  { %v1657_v4 = vmul.f32 %v1655_v33, %v1654_v32 }
 0x4fe   :  { %1658 = vst [vmem:[%s3777_s2 + $0x4] sm:$0x1] %v1657_v4  ;;  %v1659_v29 = vpack.c.bf16 %v1657_v4, %v1657_v4 }
 0x500   :  { %1885 = vmatmul.mubr.bf16.vlgmr.msra.gmra.mxu0 %v1659_v29  ;;  %1926 = vmatmul.mubr.bf16.vlgmr.msra.gmra.mxu1 %v1659_v29 }
 0x501   :  { %2181 = vmatpush1.bf16.msra.mxu0 %v3436_v42  ;;  %2222 = vmatpush1.bf16.msra.mxu1 %v3441_v44 }
 0x502   :  { %2182 = vmatprep.subr.bf16.mxu0 %v3450_v45  ;;  %2223 = vmatprep.subr.bf16.mxu1 %v3455_v46 }
 0x503   :  { %2212 = vmatprep.mubr.bf16.mxu0 %v3067_v1  ;;  %2253 = vmatprep.mubr.bf16.mxu1 %v3067_v1 }
 0x505   :  { %2183 = vmatpush1.bf16.msra.mxu0 %v3460_v47  ;;  %2224 = vmatpush1.bf16.msra.mxu1 %v3465_v48 }
 0x506   :  { %2184 = vmatprep.subr.bf16.mxu0 %v3479_v50  ;;  %2225 = vmatprep.subr.bf16.mxu1 %v3489_v52 }
 0x509   :  { %2185 = vmatpush1.bf16.msra.mxu0 %v3474_v49  ;;  %2226 = vmatpush1.bf16.msra.mxu1 %v3484_v51 }
 0x50a   :  { %2186 = vmatprep.subr.bf16.mxu0 %v3494_v53  ;;  %2227 = vmatprep.subr.bf16.mxu1 %v3500_v54 }
 0x50d   :  { %2187 = vmatpush1.bf16.msra.mxu0 %v3508_v55  ;;  %2228 = vmatpush1.bf16.msra.mxu1 %v3513_v0 }
 0x50e   :  { %2188 = vmatprep.subr.bf16.mxu0 %v3520_v3  ;;  %2229 = vmatprep.subr.bf16.mxu1 %v3525_v56 }
 0x511   :  { %2189 = vmatpush1.bf16.msra.mxu0 %v3532_v57  ;;  %2230 = vmatpush1.bf16.msra.mxu1 %v3537_v58 }
 0x512   :  { %2190 = vmatprep.subr.bf16.mxu0 %v3544_v59  ;;  %2231 = vmatprep.subr.bf16.mxu1 %v3549_v60 }
 0x515   :  { %2191 = vmatpush1.bf16.msra.mxu0 %v3556_v61  ;;  %2232 = vmatpush1.bf16.msra.mxu1 %v3561_v62 }
 0x516   :  { %2192 = vmatprep.subr.bf16.mxu0 %v3568_v63  ;;  %2233 = vmatprep.subr.bf16.mxu1 %v3573_v2 }
 0x519   :  { %2193 = vmatpush1.bf16.msra.mxu0 %v3580_v34  ;;  %2234 = vmatpush1.bf16.msra.mxu1 %v3585_v35 }
 0x51a   :  { %2194 = vmatprep.subr.bf16.mxu0 %v3592_v36  ;;  %2235 = vmatprep.subr.bf16.mxu1 %v3597_v38 }
 0x51d   :  { %2195 = vmatpush1.bf16.msra.mxu0 %v3604_v39  ;;  %2236 = vmatpush1.bf16.msra.mxu1 %v3609_v40 }
 0x51e   :  { %2508 = vmatprep.subr.bf16.mxu0 %v3426_v37  ;;  %2549 = vmatprep.subr.bf16.mxu1 %v3431_v41  ;;  %v2850_v37 = vld [vmem:[%s3776_s0 + $0x5] ss:$8 sm:$0xf] }
 0x5c0   :  { %v1886_v30 = vpop.f32.mrf.mxu0  ;;  %v1927_v5 = vpop.f32.mrf.mxu1 }
 0x5c2   :  { %v1888_v6 = vpop.f32.mrf.mxu0  ;;  %v1929_v7 = vpop.f32.mrf.mxu1 }
 0x5c3   :  { %v1940_v8 = vcombine.low %v1886_v30, %v1888_v6  ;;  %v1941_v9 = vcombine.low %v1927_v5, %v1929_v7 }
 0x5c4   :  { %v1890_v10 = vpop.f32.mrf.mxu0  ;;  %v1931_v11 = vpop.f32.mrf.mxu1 }
 0x5c5   :  { %v1948_v12 = vrot.slane %v1940_v8, %v3315_v43  ;;  %v1955_v13 = vrot.slane %v1941_v9, %v3315_v43 }
 0x5c6   :  { %v1891_v14 = vpop.f32.mrf.mxu0  ;;  %v1932_v15 = vpop.f32.mrf.mxu1 }
 0x5c7   :  { %v1956_v16 = vcombine.low %v1948_v12, %v1955_v13  ;;  %v2918_v14 = vld [vmem:[%s3776_s0 + $0x7] ss:$8 sm:$0xf] }
 0x5c9   :  { %v1963_v41 = vrot.slane %v1956_v16, %v3315_v43 }
 0x5cb   :  { %v1965_v17 = vadd.f32 %v2850_v37, %v1963_v41 }
 0x5cd   :  { %v2851_v18 = vmul.f32 -1.442695, %v1965_v17  ;;  %v1973_v21 = vrot.slane %v1965_v17, 3 }
 0x5cf   :  { %3049 = vpow2.f32 %v2851_v18 }
 0x5dc   :  { %v3050_v19 = vpop.eup %3049 }
 0x5dd   :  { %v1969_v20 = vadd.f32 1.0, %v3050_v19 }
 0x5df   :  { %3051 = vrcp.f32 %v1969_v20 }
 0x5e0   :  { %3053 = vtanh.f32 %v1973_v21 }
 0x5ec   :  { %v3052_v22 = vpop.eup %3051 }
 0x5ed   :  { %v1977_v23 = vrot.slane %v3052_v22, 1  ;;  %v3054_v24 = vpop.eup %3053  ;;  %v1983_v32 = vrot.slane %v3052_v22, 2 }
 0x5ee   :  { %v1980_v26 = vmul.f32 %v3054_v24, %v3052_v22 }
 0x5ef   :  { %v1979_v25 = vmul.f32 %v1977_v23, %v3671_v31 }
 0x5f1   :  { %v3718_v27 = vadd.f32 %v1980_v26, %v1979_v25 }
 0x5f3   :  { %v1982_v28 = vmax.f32 %v3718_v27, 0.0 }
 0x5f5   :  { %v1985_v33 = vmul.f32 %v1983_v32, %v1982_v28 }
 0x5f7   :  { %1986 = vst [vmem:[%s3777_s2 + $0x5] sm:$0x1] %v1985_v33  ;;  %v1987_v4 = vpack.c.bf16 %v1985_v33, %v1985_v33 }
 0x5f9   :  { %2213 = vmatmul.mubr.bf16.vlgmr.msra.gmra.mxu0 %v1987_v4  ;;  %2254 = vmatmul.mubr.bf16.vlgmr.msra.gmra.mxu1 %v1987_v4 }
 0x5fa   :  { %2509 = vmatpush1.bf16.msra.mxu0 %v3436_v42  ;;  %2550 = vmatpush1.bf16.msra.mxu1 %v3441_v44 }
 0x5fb   :  { %2510 = vmatprep.subr.bf16.mxu0 %v3450_v45  ;;  %2551 = vmatprep.subr.bf16.mxu1 %v3455_v46 }
 0x5fc   :  { %2540 = vmatprep.mubr.bf16.mxu0 %v3067_v1  ;;  %2581 = vmatprep.mubr.bf16.mxu1 %v3067_v1 }
 0x5fe   :  { %2511 = vmatpush1.bf16.msra.mxu0 %v3460_v47  ;;  %2552 = vmatpush1.bf16.msra.mxu1 %v3465_v48 }
 0x5ff   :  { %2512 = vmatprep.subr.bf16.mxu0 %v3479_v50  ;;  %2553 = vmatprep.subr.bf16.mxu1 %v3489_v52 }
 0x602   :  { %2513 = vmatpush1.bf16.msra.mxu0 %v3474_v49  ;;  %2554 = vmatpush1.bf16.msra.mxu1 %v3484_v51 }
 0x603   :  { %2514 = vmatprep.subr.bf16.mxu0 %v3494_v53  ;;  %2555 = vmatprep.subr.bf16.mxu1 %v3500_v54 }
 0x606   :  { %2515 = vmatpush1.bf16.msra.mxu0 %v3508_v55  ;;  %2556 = vmatpush1.bf16.msra.mxu1 %v3513_v0  ;;  %v2884_v55 = vld [vmem:[%s3776_s0 + $0x6] ss:$8 sm:$0xf] }
 0x607   :  { %2516 = vmatprep.subr.bf16.mxu0 %v3520_v3  ;;  %2557 = vmatprep.subr.bf16.mxu1 %v3525_v56 }
 0x60a   :  { %2517 = vmatpush1.bf16.msra.mxu0 %v3532_v57  ;;  %2558 = vmatpush1.bf16.msra.mxu1 %v3537_v58 }
 0x60b   :  { %2518 = vmatprep.subr.bf16.mxu0 %v3544_v59  ;;  %2559 = vmatprep.subr.bf16.mxu1 %v3549_v60 }
 0x60e   :  { %2519 = vmatpush1.bf16.msra.mxu0 %v3556_v61  ;;  %2560 = vmatpush1.bf16.msra.mxu1 %v3561_v62 }
 0x60f   :  { %2520 = vmatprep.subr.bf16.mxu0 %v3568_v63  ;;  %2561 = vmatprep.subr.bf16.mxu1 %v3573_v2 }
 0x612   :  { %2521 = vmatpush1.bf16.msra.mxu0 %v3580_v34  ;;  %2562 = vmatpush1.bf16.msra.mxu1 %v3585_v35 }
 0x613   :  { %2522 = vmatprep.subr.bf16.mxu0 %v3592_v36  ;;  %2563 = vmatprep.subr.bf16.mxu1 %v3597_v38 }
 0x616   :  { %2523 = vmatpush1.bf16.msra.mxu0 %v3604_v39  ;;  %2564 = vmatpush1.bf16.msra.mxu1 %v3609_v40 }
 0x6b9   :  { %v2214_v1 = vpop.f32.mrf.mxu0  ;;  %v2255_v42 = vpop.f32.mrf.mxu1 }
 0x6bb   :  { %v2216_v44 = vpop.f32.mrf.mxu0  ;;  %v2257_v45 = vpop.f32.mrf.mxu1 }
 0x6bc   :  { %v2268_v46 = vcombine.low %v2214_v1, %v2216_v44  ;;  %v2269_v47 = vcombine.low %v2255_v42, %v2257_v45 }
 0x6bd   :  { %v2218_v48 = vpop.f32.mrf.mxu0  ;;  %v2259_v49 = vpop.f32.mrf.mxu1 }
 0x6be   :  { %v2276_v50 = vrot.slane %v2268_v46, %v3315_v43  ;;  %v2283_v51 = vrot.slane %v2269_v47, %v3315_v43 }
 0x6bf   :  { %v2219_v52 = vpop.f32.mrf.mxu0  ;;  %v2260_v53 = vpop.f32.mrf.mxu1 }
 0x6c0   :  { %v2284_v54 = vcombine.low %v2276_v50, %v2283_v51 }
 0x6c2   :  { %v2291_v0 = vrot.slane %v2284_v54, %v3315_v43 }
 0x6c4   :  { %v2293_v3 = vadd.f32 %v2884_v55, %v2291_v0 }
 0x6c6   :  { %v2885_v56 = vmul.f32 -1.442695, %v2293_v3  ;;  %v2301_v59 = vrot.slane %v2293_v3, 3 }
 0x6c8   :  { %3055 = vpow2.f32 %v2885_v56 }
 0x6d5   :  { %v3056_v57 = vpop.eup %3055 }
 0x6d6   :  { %v2297_v58 = vadd.f32 1.0, %v3056_v57 }
 0x6d8   :  { %3057 = vrcp.f32 %v2297_v58 }
 0x6d9   :  { %3059 = vtanh.f32 %v2301_v59 }
 0x6e5   :  { %v3058_v60 = vpop.eup %3057 }
 0x6e6   :  { %v2305_v61 = vrot.slane %v3058_v60, 1  ;;  %v3060_v62 = vpop.eup %3059  ;;  %v2311_v36 = vrot.slane %v3058_v60, 2 }
 0x6e7   :  { %v2308_v2 = vmul.f32 %v3060_v62, %v3058_v60 }
 0x6e8   :  { %v2307_v63 = vmul.f32 %v2305_v61, %v3718_v27 }
 0x6ea   :  { %v2309_v34 = vadd.f32 %v2308_v2, %v2307_v63 }
 0x6ec   :  { %v2310_v35 = vmax.f32 %v2309_v34, 0.0 }
 0x6ee   :  { %v2313_v38 = vmul.f32 %v2311_v36, %v2310_v35 }
 0x6f0   :  { %2314 = vst [vmem:[%s3777_s2 + $0x6] sm:$0x1] %v2313_v38  ;;  %v2315_v39 = vpack.c.bf16 %v2313_v38, %v2313_v38 }
 0x6f2   :  { %2541 = vmatmul.mubr.bf16.vlgmr.msra.gmra.mxu0 %v2315_v39  ;;  %2582 = vmatmul.mubr.bf16.vlgmr.msra.gmra.mxu1 %v2315_v39 }
 0x7b2   :  { %v2542_v40 = vpop.f32.mrf.mxu0  ;;  %v2583_v31 = vpop.f32.mrf.mxu1 }
 0x7b4   :  { %v2544_v29 = vpop.f32.mrf.mxu0  ;;  %v2585_v30 = vpop.f32.mrf.mxu1 }
 0x7b5   :  { %v2596_v5 = vcombine.low %v2542_v40, %v2544_v29  ;;  %v2597_v6 = vcombine.low %v2583_v31, %v2585_v30 }
 0x7b6   :  { %v2546_v7 = vpop.f32.mrf.mxu0  ;;  %v2587_v8 = vpop.f32.mrf.mxu1 }
 0x7b7   :  { %v2604_v9 = vrot.slane %v2596_v5, %v3315_v43  ;;  %v2611_v10 = vrot.slane %v2597_v6, %v3315_v43 }
 0x7b8   :  { %v2547_v11 = vpop.f32.mrf.mxu0  ;;  %v2588_v12 = vpop.f32.mrf.mxu1 }
 0x7b9   :  { %v2612_v13 = vcombine.low %v2604_v9, %v2611_v10 }
 0x7bb   :  { %v2619_v15 = vrot.slane %v2612_v13, %v3315_v43 }
 0x7bd   :  { %v2621_v16 = vadd.f32 %v2918_v14, %v2619_v15 }
 0x7bf   :  { %v2919_v37 = vmul.f32 -1.442695, %v2621_v16  ;;  %v2629_v18 = vrot.slane %v2621_v16, 3 }
 0x7c1   :  { %3061 = vpow2.f32 %v2919_v37 }
 0x7ce   :  { %v3062_v41 = vpop.eup %3061 }
 0x7cf   :  { %v2625_v17 = vadd.f32 1.0, %v3062_v41 }
 0x7d1   :  { %3063 = vrcp.f32 %v2625_v17 }
 0x7d2   :  { %3065 = vtanh.f32 %v2629_v18 }
 0x7de   :  { %v3064_v19 = vpop.eup %3063 }
 0x7df   :  { %v2633_v20 = vrot.slane %v3064_v19, 1  ;;  %v3066_v21 = vpop.eup %3065  ;;  %v2639_v26 = vrot.slane %v3064_v19, 2 }
 0x7e0   :  { %v2636_v23 = vmul.f32 %v3066_v21, %v3064_v19 }
 0x7e1   :  { %v2635_v22 = vmul.f32 %v2633_v20, %v2309_v34 }
 0x7e3   :  { %v2637_v24 = vadd.f32 %v2636_v23, %v2635_v22 }
 0x7e5   :  { %v2638_v25 = vmax.f32 %v2637_v24, 0.0  ;;  %2644 = vst [vmem:[#allocation3] sm:$0x1] %v2637_v24 }
 0x7e7   :  { %v2641_v27 = vmul.f32 %v2639_v26, %v2638_v25 }
 0x7e9   :  { %2642 = vst [vmem:[%s3777_s2 + $0x7] sm:$0x1] %v2641_v27  ;;  %2643 = vst [vmem:[#allocation2] sm:$0x1] %v2641_v27 }

</bundles_post_ra>
